<compile_context>
chip_gen: v6e
topology: v6e:2x2x1
jax: 0.10.0
libtpu: 0.0.40
codegen_flags: <defaults>
</compile_context>

<pallas_src>
import functools

import jax
import jax.numpy as jnp
from jax import lax
from jax.experimental import pallas as pl
from jax.experimental.pallas import tpu as pltpu


def segrnn_kernel(x_ref, pos_ref, chan_ref, wemb_ref, bemb_ref, wih_ref,
                  bgi_ref, whh_ref, bhhn_ref, wpred_ref, bpred_ref, o_ref,
                  gi_sc, *, seg_num_x, seg_num_y, d_model, seg_len, enc_in,
                  tile_n):
    """SegRNN hot path for one tile of TILE_N rows (row = b*enc_in + c)."""
    D = d_model
    f32 = jnp.float32
    cdt = jnp.bfloat16  # MXU operand dtype

    # Resident weights / biases (fetched once; constant index maps).
    w_emb = wemb_ref[...]                       # (seg_len, D)  bf16
    w_ih = wih_ref[...]                         # (D, 3D)       bf16
    w_hh = whh_ref[...]                         # (D, 3D)       bf16
    b_emb = bemb_ref[...]                       # (1, D)        f32
    b_gi = bgi_ref[...]                         # (1, 3D)       f32 (r/z: b_ih+b_hh, n: b_ih)
    b_hh_n = jnp.broadcast_to(bhhn_ref[...], (tile_n, D))        # (T, D)

    # ---- phase 0: per-segment value embedding + fused input-side gate
    #      projection, stored to the gi scratch (off the serial path). ----
    @pl.loop(0, seg_num_x)
    def _(t):
        e = jnp.maximum(
            jnp.dot(x_ref[t], w_emb, preferred_element_type=f32) + b_emb, 0.0)
        gi = jnp.dot(e.astype(cdt), w_ih, preferred_element_type=f32) + b_gi
        gi_sc[t] = gi.astype(gi_sc.dtype)

    # ---- phase 1: serial GRU over input segments; only h @ W_hh (one fused
    #      (T,D)@(D,3D) matmul) remains on the latency-bound critical path. ----
    def enc_step(t, h):
        gh = jnp.dot(h.astype(cdt), w_hh, preferred_element_type=f32)   # (T, 3D)
        gi = gi_sc[t].astype(f32)                                        # (T, 3D)
        r = jax.nn.sigmoid(gi[:, :D] + gh[:, :D])
        z = jax.nn.sigmoid(gi[:, D:2 * D] + gh[:, D:2 * D])
        n = jnp.tanh(gi[:, 2 * D:] + r * (gh[:, 2 * D:] + b_hh_n))
        return (1.0 - z) * n + z * h

    h0 = jnp.zeros((tile_n, D), f32)
    unroll = True if seg_num_x <= 16 else 4
    hn = lax.fori_loop(0, seg_num_x, enc_step, h0, unroll=unroll)

    # ---- phase 2: ONE batched GRU decode step over all output segments.
    #      Hidden-side gates computed once on hn; input-side gates come from
    #      the tiny resident channel/position tables (no matmul, no B/Sy
    #      redundancy). n-major layout so the epilogue is a single reshape. ----
    gh2 = jnp.dot(hn.astype(cdt), w_hh, preferred_element_type=f32)      # (T, 3D)
    rep = tile_n // enc_in
    chan_rows = jnp.broadcast_to(chan_ref[...][None],
                                 (rep, enc_in, 3 * D)).reshape(tile_n, 3 * D)
    pos_g = pos_ref[...][None, :, :]                                     # (1, Sy, 3D)
    qrz = (chan_rows + gh2)[:, None, :]                                  # (T, 1, 3D)
    r2 = jax.nn.sigmoid(qrz[..., :D] + pos_g[..., :D])
    z2 = jax.nn.sigmoid(qrz[..., D:2 * D] + pos_g[..., D:2 * D])
    n2 = jnp.tanh(chan_rows[:, None, 2 * D:] + pos_g[..., 2 * D:]
                  + r2 * (gh2[:, None, 2 * D:] + bhhn_ref[...]))
    hy = (1.0 - z2) * n2 + z2 * hn[:, None, :]                           # (T, Sy, D)

    # TODO(synk): nn.Dropout in the predict head is identity (eval-mode forward).
    out = (jnp.einsum('tsd,dk->tsk', hy.astype(cdt), wpred_ref[...],
                      preferred_element_type=f32) + bpred_ref[...])      # (T, Sy, seg_len)
    # Lane-dense store: (T, pred_len) with column sy*seg_len + j.
    o_ref[...] = out.reshape(tile_n, seg_num_y * seg_len)


def _padded_bytes(shape, itemsize):
    """VMEM footprint of a block, rounded to (sublane, lane) tiles."""
    dims = list(shape)
    sub = 16 if itemsize == 2 else 8
    dims[-1] = -(-dims[-1] // 128) * 128
    if len(dims) >= 2:
        dims[-2] = -(-dims[-2] // sub) * sub
    n = itemsize
    for d in dims:
        n *= d
    return n


def _vmem_capacity_bytes():
    try:
        info = pltpu.get_tpu_info()
        cap = getattr(info, "vmem_capacity_bytes", None)
        if cap:
            return int(cap)
    except Exception:
        pass
    return 64 * 1024 * 1024  # conservative default (v7x per-TC VMEM)


def _pick_tile_n(N, *, enc_in, seg_num_x, seg_num_y, seg_len, d_model,
                 pred_len, vmem_limit_bytes):
    """Largest TILE_N (divides N, multiple of enc_in, 16-aligned or == N) whose
    modelled VMEM footprint fits; prefers >= 2 grid steps (v7x dual-TC)."""
    D = d_model
    # Resident blocks (weights/biases + decode gate tables), double-buffered.
    fixed = 2 * (_padded_bytes((seg_len, D), 2)
                 + _padded_bytes((1, D), 4)
                 + 2 * _padded_bytes((D, 3 * D), 2)        # w_ih, w_hh (bf16)
                 + _padded_bytes((1, 3 * D), 4)
                 + _padded_bytes((1, D), 4)
                 + _padded_bytes((D, seg_len), 2)
                 + _padded_bytes((1, seg_len), 4)
                 + _padded_bytes((seg_num_y, 3 * D), 4)     # pos gates
                 + _padded_bytes((enc_in, 3 * D), 4))       # channel gates
    fixed += 2 * 1024 * 1024                                # Mosaic scratch headroom

    def tile_bytes(t):
        x_b = _padded_bytes((seg_num_x, t, seg_len), 2)
        o_b = _padded_bytes((t, pred_len), 4)
        gi_b = _padded_bytes((seg_num_x, t, 3 * D), 2)      # bf16 scratch
        tmp = (_padded_bytes((t, 3 * D), 4) + _padded_bytes((t, D), 4)   # phases 0/1
               + 4 * _padded_bytes((t, seg_num_y, D), 4)                 # phase 2 gates/hy
               + 2 * _padded_bytes((t, seg_num_y, seg_len), 4))          # epilogue
        return 2 * (x_b + o_b) + gi_b + tmp

    budget = int(0.85 * vmem_limit_bytes) - fixed
    cands = sorted({t for t in range(16, N + 1, 16)
                    if N % t == 0 and t % enc_in == 0} | {N})
    fits = [t for t in cands if tile_bytes(t) <= budget]
    multi = [t for t in fits if N // t >= 2]
    if multi:
        return max(multi)
    if fits:
        return max(fits)
    return min(cands)


def segrnn_forward(x, params, *, seg_len, d_model, pred_len):
    """x: (B, seq_len, enc_in) float32 -> (B, pred_len, enc_in)."""
    B, seq_len, enc_in = x.shape
    seg_num_x = seq_len // seg_len
    seg_num_y = pred_len // seg_len
    N = B * enc_in
    D = d_model
    half = D // 2
    f32, bf16 = jnp.float32, jnp.bfloat16

    # --- glue: last-value normalization + segmentation (segment-major) ---
    seq_last = x[:, -1:, :]                                        # (B, 1, enc_in)
    xn = (x - seq_last).transpose(0, 2, 1)                         # (B, enc_in, seq_len)
    x_seg = xn.reshape(N, seg_num_x, seg_len).transpose(1, 0, 2).astype(bf16)

    # --- glue: fold GRU biases (r/z: b_ih+b_hh; n: b_ih; b_hh_n separate) ---
    w_ih_full = params['w_ih'].astype(f32)                         # (D, 3D)
    b_ih = params['b_ih'].astype(f32)
    b_hh = params['b_hh'].astype(f32)
    b_gi = jnp.concatenate([b_ih[:, :2 * D] + b_hh[:, :2 * D], b_ih[:, 2 * D:]],
                           axis=-1)                                # (1, 3D)
    b_hh_n = b_hh[:, 2 * D:]                                       # (1, D)

    # --- glue: decode input-side gates depend only on (sy) and (channel);
    #     project once (tiny f32 matmuls), biases folded into the channel part.
    pos_gates = params['pos_emb'] @ w_ih_full[:half, :]            # (Sy, 3D)
    chan_gates = params['channel_emb'] @ w_ih_full[half:, :] + b_gi  # (enc_in, 3D)

    w_emb = params['w_emb'].astype(bf16)
    w_ih = params['w_ih'].astype(bf16)
    w_hh = params['w_hh'].astype(bf16)
    w_pred = params['w_pred'].astype(bf16)
    b_emb = params['b_emb'].astype(f32)
    b_pred = params['b_pred'].astype(f32)

    vmem_cap = _vmem_capacity_bytes()
    vmem_limit = min(vmem_cap - 12 * 1024 * 1024, 100 * 1024 * 1024)
    TILE_N = _pick_tile_n(N, enc_in=enc_in, seg_num_x=seg_num_x,
                          seg_num_y=seg_num_y, seg_len=seg_len, d_model=D,
                          pred_len=pred_len, vmem_limit_bytes=vmem_limit)
    assert N % TILE_N == 0 and TILE_N % enc_in == 0
    grid = (N // TILE_N,)

    kernel = functools.partial(segrnn_kernel, seg_num_x=seg_num_x,
                               seg_num_y=seg_num_y, d_model=D,
                               seg_len=seg_len, enc_in=enc_in, tile_n=TILE_N)

    def fixed(shape):
        zeros = (0,) * len(shape)
        return pl.BlockSpec(shape, lambda i, _z=zeros: _z)

    y_dense = pl.pallas_call(
        kernel,
        out_shape=jax.ShapeDtypeStruct((N, pred_len), f32),
        grid=grid,
        in_specs=[
            pl.BlockSpec((seg_num_x, TILE_N, seg_len), lambda i: (0, i, 0)),
            fixed((seg_num_y, 3 * D)),       # pos gates     (resident)
            fixed((enc_in, 3 * D)),          # channel gates (resident)
            fixed((seg_len, D)), fixed((1, D)),          # w_emb, b_emb
            fixed((D, 3 * D)), fixed((1, 3 * D)),        # w_ih, folded biases
            fixed((D, 3 * D)), fixed((1, D)),            # w_hh, b_hh_n
            fixed((D, seg_len)), fixed((1, seg_len)),    # w_pred, b_pred
        ],
        out_specs=pl.BlockSpec((TILE_N, pred_len), lambda i: (i, 0)),
        scratch_shapes=[pltpu.VMEM((seg_num_x, TILE_N, 3 * D), bf16)],
        compiler_params=pltpu.CompilerParams(
            dimension_semantics=("parallel",),
            vmem_limit_bytes=int(vmem_limit)),
    )(x_seg, pos_gates, chan_gates, w_emb, b_emb, w_ih, b_gi, w_hh, b_hh_n,
      w_pred, b_pred)

    # (N, pred_len) -> (B, enc_in, pred_len) -> (B, pred_len, enc_in) + seq_last
    y = y_dense.reshape(B, enc_in, pred_len).transpose(0, 2, 1) + seq_last
    return y


def segrnn_reference(x, params, *, seg_len, d_model, pred_len):
    """Pure-JAX (f32) reference of the same forward pass."""
    B, seq_len, enc_in = x.shape
    seg_num_x = seq_len // seg_len
    seg_num_y = pred_len // seg_len
    N = B * enc_in
    D = d_model

    seq_last = x[:, -1:, :]
    xn = (x - seq_last).transpose(0, 2, 1).reshape(N, seg_num_x, seg_len)
    e = jax.nn.relu(xn @ params['w_emb'] + params['b_emb'])        # (N, Sx, D)

    def cell(x_in, h):
        gi = x_in @ params['w_ih'] + params['b_ih']
        gh = h @ params['w_hh'] + params['b_hh']
        r = jax.nn.sigmoid(gi[:, :D] + gh[:, :D])
        z = jax.nn.sigmoid(gi[:, D:2 * D] + gh[:, D:2 * D])
        n = jnp.tanh(gi[:, 2 * D:] + r * gh[:, 2 * D:])
        return (1.0 - z) * n + z * h

    h = jnp.zeros((N, D), jnp.float32)
    for t in range(seg_num_x):
        h = cell(e[:, t, :], h)

    half = D // 2
    pe = jnp.concatenate(
        [jnp.broadcast_to(params['pos_emb'][None], (enc_in, seg_num_y, half)),
         jnp.broadcast_to(params['channel_emb'][:, None], (enc_in, seg_num_y, half))],
        axis=-1).reshape(enc_in * seg_num_y, D)
    pe_full = jnp.tile(pe, (B, 1))                                 # (B*enc_in*Sy, D)
    h_full = jnp.repeat(h, seg_num_y, axis=0)                      # (B*enc_in*Sy, D)

    hy = cell(pe_full, h_full)
    out = hy @ params['w_pred'] + params['b_pred']                 # (..., seg_len)
    y = out.reshape(B, enc_in, pred_len).transpose(0, 2, 1) + seq_last
    return y


def init_params(key, *, seg_len, d_model, enc_in, seg_num_y):
    ks = jax.random.split(key, 10)
    s = 0.1
    return {
        'w_emb':       s * jax.random.normal(ks[0], (seg_len, d_model), jnp.float32),
        'b_emb':       s * jax.random.normal(ks[1], (1, d_model), jnp.float32),
        'w_ih':        s * jax.random.normal(ks[2], (d_model, 3 * d_model), jnp.float32),
        'b_ih':        s * jax.random.normal(ks[3], (1, 3 * d_model), jnp.float32),
        'w_hh':        s * jax.random.normal(ks[4], (d_model, 3 * d_model), jnp.float32),
        'b_hh':        s * jax.random.normal(ks[5], (1, 3 * d_model), jnp.float32),
        'pos_emb':     jax.random.normal(ks[6], (seg_num_y, d_model // 2), jnp.float32),
        'channel_emb': jax.random.normal(ks[7], (enc_in, d_model // 2), jnp.float32),
        'w_pred':      s * jax.random.normal(ks[8], (d_model, seg_len), jnp.float32),
        'b_pred':      s * jax.random.normal(ks[9], (1, seg_len), jnp.float32),
    }


if __name__ == "__main__":
    # small config: seq_len=16, pred_len=8, seg_len=4, enc_in=4, d_model=32, batch=2
    B, seq_len, pred_len, seg_len, enc_in, d_model = 2, 16, 8, 4, 4, 32
    seg_num_y = pred_len // seg_len

    key = jax.random.PRNGKey(0)
    kx, kp = jax.random.split(key)
    x = jax.random.normal(kx, (B, seq_len, enc_in), jnp.float32)
    params = init_params(kp, seg_len=seg_len, d_model=d_model,
                         enc_in=enc_in, seg_num_y=seg_num_y)

    fwd = jax.jit(functools.partial(segrnn_forward, seg_len=seg_len,
                                    d_model=d_model, pred_len=pred_len))
    y = fwd(x, params)
    y = jax.block_until_ready(y)

    y_ref = segrnn_reference(x, params, seg_len=seg_len, d_model=d_model,
                             pred_len=pred_len)
    assert y.shape == (B, pred_len, enc_in)
    # bf16 MXU operands vs f32 reference -> loosened tolerance.
    assert jnp.allclose(y, y_ref, atol=3e-2, rtol=3e-2), "mismatch vs JAX reference"

    print("KERNEL_OK")
</pallas_src>

<mosaic_0001>
module attributes {stable_mosaic.version = 11 : i64} {
  func.func @segrnn_kernel(%arg0: i32, %arg1: memref<4x8x4xbf16, #tpu.memory_space<vmem>>, %arg2: memref<2x96xf32, #tpu.memory_space<vmem>>, %arg3: memref<4x96xf32, #tpu.memory_space<vmem>>, %arg4: memref<4x32xbf16, #tpu.memory_space<vmem>>, %arg5: memref<1x32xf32, #tpu.memory_space<vmem>>, %arg6: memref<32x96xbf16, #tpu.memory_space<vmem>>, %arg7: memref<1x96xf32, #tpu.memory_space<vmem>>, %arg8: memref<32x96xbf16, #tpu.memory_space<vmem>>, %arg9: memref<1x32xf32, #tpu.memory_space<vmem>>, %arg10: memref<32x4xbf16, #tpu.memory_space<vmem>>, %arg11: memref<1x4xf32, #tpu.memory_space<vmem>>, %arg12: memref<8x8xf32, #tpu.memory_space<vmem>>, %arg13: memref<4x8x96xbf16, #tpu.memory_space<vmem>>) attributes {dimension_semantics = [#tpu.dimension_semantics<parallel>], iteration_bounds = array<i64: 1>, scalar_prefetch = 0 : i64, scratch_operands = 1 : i64, tpu.core_type = #tpu.core_type<tc>, window_params = [{transform_indices = @transform_0, window_bounds = array<i64: 4, 8, 4>}, {pipeline_mode = #tpu.pipeline_mode<synchronous>, transform_indices = @transform_1, window_bounds = array<i64: 2, 96>}, {pipeline_mode = #tpu.pipeline_mode<synchronous>, transform_indices = @transform_2, window_bounds = array<i64: 4, 96>}, {pipeline_mode = #tpu.pipeline_mode<synchronous>, transform_indices = @transform_3, window_bounds = array<i64: 4, 32>}, {pipeline_mode = #tpu.pipeline_mode<synchronous>, transform_indices = @transform_4, window_bounds = array<i64: 1, 32>}, {pipeline_mode = #tpu.pipeline_mode<synchronous>, transform_indices = @transform_5, window_bounds = array<i64: 32, 96>}, {pipeline_mode = #tpu.pipeline_mode<synchronous>, transform_indices = @transform_6, window_bounds = array<i64: 1, 96>}, {pipeline_mode = #tpu.pipeline_mode<synchronous>, transform_indices = @transform_7, window_bounds = array<i64: 32, 96>}, {pipeline_mode = #tpu.pipeline_mode<synchronous>, transform_indices = @transform_8, window_bounds = array<i64: 1, 32>}, {pipeline_mode = #tpu.pipeline_mode<synchronous>, transform_indices = @transform_9, window_bounds = array<i64: 32, 4>}, {pipeline_mode = #tpu.pipeline_mode<synchronous>, transform_indices = @transform_10, window_bounds = array<i64: 1, 4>}, {transform_indices = @transform_11, window_bounds = array<i64: 8, 8>}]} {
    %c0 = arith.constant 0 : index
    %c0_0 = arith.constant 0 : index
    %0 = vector.load %arg4[%c0, %c0_0] : memref<4x32xbf16, #tpu.memory_space<vmem>>, vector<4x32xbf16>
    %c0_1 = arith.constant 0 : index
    %c0_2 = arith.constant 0 : index
    %1 = vector.load %arg6[%c0_1, %c0_2] : memref<32x96xbf16, #tpu.memory_space<vmem>>, vector<32x96xbf16>
    %c0_3 = arith.constant 0 : index
    %c0_4 = arith.constant 0 : index
    %2 = vector.load %arg8[%c0_3, %c0_4] : memref<32x96xbf16, #tpu.memory_space<vmem>>, vector<32x96xbf16>
    %c0_5 = arith.constant 0 : index
    %c0_6 = arith.constant 0 : index
    %3 = vector.load %arg5[%c0_5, %c0_6] : memref<1x32xf32, #tpu.memory_space<vmem>>, vector<1x32xf32>
    %c0_7 = arith.constant 0 : index
    %c0_8 = arith.constant 0 : index
    %4 = vector.load %arg7[%c0_7, %c0_8] : memref<1x96xf32, #tpu.memory_space<vmem>>, vector<1x96xf32>
    %c0_9 = arith.constant 0 : index
    %c0_10 = arith.constant 0 : index
    %5 = vector.load %arg9[%c0_9, %c0_10] : memref<1x32xf32, #tpu.memory_space<vmem>>, vector<1x32xf32>
    %6 = vector.shape_cast %5 : vector<1x32xf32> to vector<1x32xf32>
    %7 = vector.broadcast %6 : vector<1x32xf32> to vector<8x32xf32>
    %c0_i32 = arith.constant 0 : i32
    %c4_i32 = arith.constant 4 : i32
    %8 = arith.addi %c0_i32, %c4_i32 : i32
    %c1_i32 = arith.constant 1 : i32
    scf.for %arg14 = %c0_i32 to %8 step %c1_i32  : i32 {
      %c1_i32_56 = arith.constant 1 : i32
      %205 = arith.muli %arg14, %c1_i32_56 : i32
      %c0_i32_57 = arith.constant 0 : i32
      %206 = arith.addi %c0_i32_57, %205 : i32
      %207 = arith.index_cast %206 : i32 to index
      %c0_58 = arith.constant 0 : index
      %c0_59 = arith.constant 0 : index
      %208 = vector.load %arg1[%207, %c0_58, %c0_59] : memref<4x8x4xbf16, #tpu.memory_space<vmem>>, vector<1x8x4xbf16>
      %209 = vector.shape_cast %208 : vector<1x8x4xbf16> to vector<8x4xbf16>
      %cst_60 = arith.constant dense<0.000000e+00> : vector<8x32xf32>
      %210 = tpu.matmul %209, %0, %cst_60 {dimension_numbers = #tpu.dot_dimension_numbers<[1], [0], [0], [1], [0, 0, 1, 1], [], []>} : vector<8x4xbf16>, vector<4x32xbf16>, vector<8x32xf32> -> vector<8x32xf32>
      %211 = vector.broadcast %3 : vector<1x32xf32> to vector<8x32xf32>
      %212 = arith.addf %210, %211 : vector<8x32xf32>
      %cst_61 = arith.constant 0.000000e+00 : f32
      %213 = vector.broadcast %cst_61 : f32 to vector<8x32xf32>
      %214 = arith.maximumf %212, %213 : vector<8x32xf32>
      %215 = arith.truncf %214 : vector<8x32xf32> to vector<8x32xbf16>
      %cst_62 = arith.constant dense<0.000000e+00> : vector<8x96xf32>
      %216 = tpu.matmul %215, %1, %cst_62 {dimension_numbers = #tpu.dot_dimension_numbers<[1], [0], [0], [1], [0, 0, 1, 1], [], []>} : vector<8x32xbf16>, vector<32x96xbf16>, vector<8x96xf32> -> vector<8x96xf32>
      %217 = vector.broadcast %4 : vector<1x96xf32> to vector<8x96xf32>
      %218 = arith.addf %216, %217 : vector<8x96xf32>
      %219 = arith.truncf %218 : vector<8x96xf32> to vector<8x96xbf16>
      %220 = arith.index_cast %206 : i32 to index
      %c0_63 = arith.constant 0 : index
      %c0_64 = arith.constant 0 : index
      %221 = vector.load %arg13[%220, %c0_63, %c0_64] : memref<4x8x96xbf16, #tpu.memory_space<vmem>>, vector<1x8x96xbf16>
      %222 = vector.shape_cast %221 : vector<1x8x96xbf16> to vector<8x96xbf16>
      %223 = vector.shape_cast %219 : vector<8x96xbf16> to vector<1x8x96xbf16>
      tpu.vector_store %arg13[%220, %c0_63, %c0_64], %223 {strides = array<i32>} : memref<4x8x96xbf16, #tpu.memory_space<vmem>>, vector<1x8x96xbf16>,
    }
    %c4_i32_11 = arith.constant 4 : i32
    %cst = arith.constant 0.000000e+00 : f32
    %9 = vector.broadcast %cst : f32 to vector<8x32xf32>
    %c0_i32_12 = arith.constant 0 : i32
    %10 = arith.truncf %9 : vector<8x32xf32> to vector<8x32xbf16>
    %cst_13 = arith.constant dense<0.000000e+00> : vector<8x96xf32>
    %11 = tpu.matmul %10, %2, %cst_13 {dimension_numbers = #tpu.dot_dimension_numbers<[1], [0], [0], [1], [0, 0, 1, 1], [], []>} : vector<8x32xbf16>, vector<32x96xbf16>, vector<8x96xf32> -> vector<8x96xf32>
    %12 = arith.index_cast %c0_i32_12 : i32 to index
    %c0_14 = arith.constant 0 : index
    %c0_15 = arith.constant 0 : index
    %13 = vector.load %arg13[%12, %c0_14, %c0_15] : memref<4x8x96xbf16, #tpu.memory_space<vmem>>, vector<1x8x96xbf16>
    %14 = vector.shape_cast %13 : vector<1x8x96xbf16> to vector<8x96xbf16>
    %15 = arith.extf %14 : vector<8x96xbf16> to vector<8x96xf32>
    %16 = vector.extract_strided_slice %15 {offsets = [0, 0], sizes = [8, 32], strides = [1, 1]} : vector<8x96xf32> to vector<8x32xf32>
    %17 = vector.extract_strided_slice %11 {offsets = [0, 0], sizes = [8, 32], strides = [1, 1]} : vector<8x96xf32> to vector<8x32xf32>
    %18 = arith.addf %16, %17 : vector<8x32xf32>
    %19 = arith.negf %18 : vector<8x32xf32>
    %20 = math.exp %19 : vector<8x32xf32>
    %cst_16 = arith.constant 1.000000e+00 : f32
    %21 = vector.broadcast %cst_16 : f32 to vector<8x32xf32>
    %22 = arith.addf %21, %20 : vector<8x32xf32>
    %23 = arith.divf %21, %22 : vector<8x32xf32>
    %24 = vector.extract_strided_slice %15 {offsets = [0, 32], sizes = [8, 32], strides = [1, 1]} : vector<8x96xf32> to vector<8x32xf32>
    %25 = vector.extract_strided_slice %11 {offsets = [0, 32], sizes = [8, 32], strides = [1, 1]} : vector<8x96xf32> to vector<8x32xf32>
    %26 = arith.addf %24, %25 : vector<8x32xf32>
    %27 = arith.negf %26 : vector<8x32xf32>
    %28 = math.exp %27 : vector<8x32xf32>
    %cst_17 = arith.constant 1.000000e+00 : f32
    %29 = vector.broadcast %cst_17 : f32 to vector<8x32xf32>
    %30 = arith.addf %29, %28 : vector<8x32xf32>
    %31 = arith.divf %29, %30 : vector<8x32xf32>
    %32 = vector.extract_strided_slice %15 {offsets = [0, 64], sizes = [8, 32], strides = [1, 1]} : vector<8x96xf32> to vector<8x32xf32>
    %33 = vector.extract_strided_slice %11 {offsets = [0, 64], sizes = [8, 32], strides = [1, 1]} : vector<8x96xf32> to vector<8x32xf32>
    %34 = arith.addf %33, %7 : vector<8x32xf32>
    %35 = arith.mulf %23, %34 : vector<8x32xf32>
    %36 = arith.addf %32, %35 : vector<8x32xf32>
    %37 = math.tanh %36 : vector<8x32xf32>
    %cst_18 = arith.constant 1.000000e+00 : f32
    %38 = vector.broadcast %cst_18 : f32 to vector<8x32xf32>
    %39 = arith.subf %38, %31 : vector<8x32xf32>
    %40 = arith.mulf %39, %37 : vector<8x32xf32>
    %41 = arith.mulf %31, %9 : vector<8x32xf32>
    %42 = arith.addf %40, %41 : vector<8x32xf32>
    %c1_i32_19 = arith.constant 1 : i32
    %43 = arith.truncf %42 : vector<8x32xf32> to vector<8x32xbf16>
    %cst_20 = arith.constant dense<0.000000e+00> : vector<8x96xf32>
    %44 = tpu.matmul %43, %2, %cst_20 {dimension_numbers = #tpu.dot_dimension_numbers<[1], [0], [0], [1], [0, 0, 1, 1], [], []>} : vector<8x32xbf16>, vector<32x96xbf16>, vector<8x96xf32> -> vector<8x96xf32>
    %45 = arith.index_cast %c1_i32_19 : i32 to index
    %c0_21 = arith.constant 0 : index
    %c0_22 = arith.constant 0 : index
    %46 = vector.load %arg13[%45, %c0_21, %c0_22] : memref<4x8x96xbf16, #tpu.memory_space<vmem>>, vector<1x8x96xbf16>
    %47 = vector.shape_cast %46 : vector<1x8x96xbf16> to vector<8x96xbf16>
    %48 = arith.extf %47 : vector<8x96xbf16> to vector<8x96xf32>
    %49 = vector.extract_strided_slice %48 {offsets = [0, 0], sizes = [8, 32], strides = [1, 1]} : vector<8x96xf32> to vector<8x32xf32>
    %50 = vector.extract_strided_slice %44 {offsets = [0, 0], sizes = [8, 32], strides = [1, 1]} : vector<8x96xf32> to vector<8x32xf32>
    %51 = arith.addf %49, %50 : vector<8x32xf32>
    %52 = arith.negf %51 : vector<8x32xf32>
    %53 = math.exp %52 : vector<8x32xf32>
    %cst_23 = arith.constant 1.000000e+00 : f32
    %54 = vector.broadcast %cst_23 : f32 to vector<8x32xf32>
    %55 = arith.addf %54, %53 : vector<8x32xf32>
    %56 = arith.divf %54, %55 : vector<8x32xf32>
    %57 = vector.extract_strided_slice %48 {offsets = [0, 32], sizes = [8, 32], strides = [1, 1]} : vector<8x96xf32> to vector<8x32xf32>
    %58 = vector.extract_strided_slice %44 {offsets = [0, 32], sizes = [8, 32], strides = [1, 1]} : vector<8x96xf32> to vector<8x32xf32>
    %59 = arith.addf %57, %58 : vector<8x32xf32>
    %60 = arith.negf %59 : vector<8x32xf32>
    %61 = math.exp %60 : vector<8x32xf32>
    %cst_24 = arith.constant 1.000000e+00 : f32
    %62 = vector.broadcast %cst_24 : f32 to vector<8x32xf32>
    %63 = arith.addf %62, %61 : vector<8x32xf32>
    %64 = arith.divf %62, %63 : vector<8x32xf32>
    %65 = vector.extract_strided_slice %48 {offsets = [0, 64], sizes = [8, 32], strides = [1, 1]} : vector<8x96xf32> to vector<8x32xf32>
    %66 = vector.extract_strided_slice %44 {offsets = [0, 64], sizes = [8, 32], strides = [1, 1]} : vector<8x96xf32> to vector<8x32xf32>
    %67 = arith.addf %66, %7 : vector<8x32xf32>
    %68 = arith.mulf %56, %67 : vector<8x32xf32>
    %69 = arith.addf %65, %68 : vector<8x32xf32>
    %70 = math.tanh %69 : vector<8x32xf32>
    %cst_25 = arith.constant 1.000000e+00 : f32
    %71 = vector.broadcast %cst_25 : f32 to vector<8x32xf32>
    %72 = arith.subf %71, %64 : vector<8x32xf32>
    %73 = arith.mulf %72, %70 : vector<8x32xf32>
    %74 = arith.mulf %64, %42 : vector<8x32xf32>
    %75 = arith.addf %73, %74 : vector<8x32xf32>
    %c2_i32 = arith.constant 2 : i32
    %76 = arith.truncf %75 : vector<8x32xf32> to vector<8x32xbf16>
    %cst_26 = arith.constant dense<0.000000e+00> : vector<8x96xf32>
    %77 = tpu.matmul %76, %2, %cst_26 {dimension_numbers = #tpu.dot_dimension_numbers<[1], [0], [0], [1], [0, 0, 1, 1], [], []>} : vector<8x32xbf16>, vector<32x96xbf16>, vector<8x96xf32> -> vector<8x96xf32>
    %78 = arith.index_cast %c2_i32 : i32 to index
    %c0_27 = arith.constant 0 : index
    %c0_28 = arith.constant 0 : index
    %79 = vector.load %arg13[%78, %c0_27, %c0_28] : memref<4x8x96xbf16, #tpu.memory_space<vmem>>, vector<1x8x96xbf16>
    %80 = vector.shape_cast %79 : vector<1x8x96xbf16> to vector<8x96xbf16>
    %81 = arith.extf %80 : vector<8x96xbf16> to vector<8x96xf32>
    %82 = vector.extract_strided_slice %81 {offsets = [0, 0], sizes = [8, 32], strides = [1, 1]} : vector<8x96xf32> to vector<8x32xf32>
    %83 = vector.extract_strided_slice %77 {offsets = [0, 0], sizes = [8, 32], strides = [1, 1]} : vector<8x96xf32> to vector<8x32xf32>
    %84 = arith.addf %82, %83 : vector<8x32xf32>
    %85 = arith.negf %84 : vector<8x32xf32>
    %86 = math.exp %85 : vector<8x32xf32>
    %cst_29 = arith.constant 1.000000e+00 : f32
    %87 = vector.broadcast %cst_29 : f32 to vector<8x32xf32>
    %88 = arith.addf %87, %86 : vector<8x32xf32>
    %89 = arith.divf %87, %88 : vector<8x32xf32>
    %90 = vector.extract_strided_slice %81 {offsets = [0, 32], sizes = [8, 32], strides = [1, 1]} : vector<8x96xf32> to vector<8x32xf32>
    %91 = vector.extract_strided_slice %77 {offsets = [0, 32], sizes = [8, 32], strides = [1, 1]} : vector<8x96xf32> to vector<8x32xf32>
    %92 = arith.addf %90, %91 : vector<8x32xf32>
    %93 = arith.negf %92 : vector<8x32xf32>
    %94 = math.exp %93 : vector<8x32xf32>
    %cst_30 = arith.constant 1.000000e+00 : f32
    %95 = vector.broadcast %cst_30 : f32 to vector<8x32xf32>
    %96 = arith.addf %95, %94 : vector<8x32xf32>
    %97 = arith.divf %95, %96 : vector<8x32xf32>
    %98 = vector.extract_strided_slice %81 {offsets = [0, 64], sizes = [8, 32], strides = [1, 1]} : vector<8x96xf32> to vector<8x32xf32>
    %99 = vector.extract_strided_slice %77 {offsets = [0, 64], sizes = [8, 32], strides = [1, 1]} : vector<8x96xf32> to vector<8x32xf32>
    %100 = arith.addf %99, %7 : vector<8x32xf32>
    %101 = arith.mulf %89, %100 : vector<8x32xf32>
    %102 = arith.addf %98, %101 : vector<8x32xf32>
    %103 = math.tanh %102 : vector<8x32xf32>
    %cst_31 = arith.constant 1.000000e+00 : f32
    %104 = vector.broadcast %cst_31 : f32 to vector<8x32xf32>
    %105 = arith.subf %104, %97 : vector<8x32xf32>
    %106 = arith.mulf %105, %103 : vector<8x32xf32>
    %107 = arith.mulf %97, %75 : vector<8x32xf32>
    %108 = arith.addf %106, %107 : vector<8x32xf32>
    %c3_i32 = arith.constant 3 : i32
    %109 = arith.truncf %108 : vector<8x32xf32> to vector<8x32xbf16>
    %cst_32 = arith.constant dense<0.000000e+00> : vector<8x96xf32>
    %110 = tpu.matmul %109, %2, %cst_32 {dimension_numbers = #tpu.dot_dimension_numbers<[1], [0], [0], [1], [0, 0, 1, 1], [], []>} : vector<8x32xbf16>, vector<32x96xbf16>, vector<8x96xf32> -> vector<8x96xf32>
    %111 = arith.index_cast %c3_i32 : i32 to index
    %c0_33 = arith.constant 0 : index
    %c0_34 = arith.constant 0 : index
    %112 = vector.load %arg13[%111, %c0_33, %c0_34] : memref<4x8x96xbf16, #tpu.memory_space<vmem>>, vector<1x8x96xbf16>
    %113 = vector.shape_cast %112 : vector<1x8x96xbf16> to vector<8x96xbf16>
    %114 = arith.extf %113 : vector<8x96xbf16> to vector<8x96xf32>
    %115 = vector.extract_strided_slice %114 {offsets = [0, 0], sizes = [8, 32], strides = [1, 1]} : vector<8x96xf32> to vector<8x32xf32>
    %116 = vector.extract_strided_slice %110 {offsets = [0, 0], sizes = [8, 32], strides = [1, 1]} : vector<8x96xf32> to vector<8x32xf32>
    %117 = arith.addf %115, %116 : vector<8x32xf32>
    %118 = arith.negf %117 : vector<8x32xf32>
    %119 = math.exp %118 : vector<8x32xf32>
    %cst_35 = arith.constant 1.000000e+00 : f32
    %120 = vector.broadcast %cst_35 : f32 to vector<8x32xf32>
    %121 = arith.addf %120, %119 : vector<8x32xf32>
    %122 = arith.divf %120, %121 : vector<8x32xf32>
    %123 = vector.extract_strided_slice %114 {offsets = [0, 32], sizes = [8, 32], strides = [1, 1]} : vector<8x96xf32> to vector<8x32xf32>
    %124 = vector.extract_strided_slice %110 {offsets = [0, 32], sizes = [8, 32], strides = [1, 1]} : vector<8x96xf32> to vector<8x32xf32>
    %125 = arith.addf %123, %124 : vector<8x32xf32>
    %126 = arith.negf %125 : vector<8x32xf32>
    %127 = math.exp %126 : vector<8x32xf32>
    %cst_36 = arith.constant 1.000000e+00 : f32
    %128 = vector.broadcast %cst_36 : f32 to vector<8x32xf32>
    %129 = arith.addf %128, %127 : vector<8x32xf32>
    %130 = arith.divf %128, %129 : vector<8x32xf32>
    %131 = vector.extract_strided_slice %114 {offsets = [0, 64], sizes = [8, 32], strides = [1, 1]} : vector<8x96xf32> to vector<8x32xf32>
    %132 = vector.extract_strided_slice %110 {offsets = [0, 64], sizes = [8, 32], strides = [1, 1]} : vector<8x96xf32> to vector<8x32xf32>
    %133 = arith.addf %132, %7 : vector<8x32xf32>
    %134 = arith.mulf %122, %133 : vector<8x32xf32>
    %135 = arith.addf %131, %134 : vector<8x32xf32>
    %136 = math.tanh %135 : vector<8x32xf32>
    %cst_37 = arith.constant 1.000000e+00 : f32
    %137 = vector.broadcast %cst_37 : f32 to vector<8x32xf32>
    %138 = arith.subf %137, %130 : vector<8x32xf32>
    %139 = arith.mulf %138, %136 : vector<8x32xf32>
    %140 = arith.mulf %130, %108 : vector<8x32xf32>
    %141 = arith.addf %139, %140 : vector<8x32xf32>
    %c4_i32_38 = arith.constant 4 : i32
    %142 = arith.truncf %141 : vector<8x32xf32> to vector<8x32xbf16>
    %cst_39 = arith.constant dense<0.000000e+00> : vector<8x96xf32>
    %143 = tpu.matmul %142, %2, %cst_39 {dimension_numbers = #tpu.dot_dimension_numbers<[1], [0], [0], [1], [0, 0, 1, 1], [], []>} : vector<8x32xbf16>, vector<32x96xbf16>, vector<8x96xf32> -> vector<8x96xf32>
    %c0_40 = arith.constant 0 : index
    %c0_41 = arith.constant 0 : index
    %144 = vector.load %arg3[%c0_40, %c0_41] : memref<4x96xf32, #tpu.memory_space<vmem>>, vector<4x96xf32>
    %145 = vector.shape_cast %144 : vector<4x96xf32> to vector<1x4x96xf32>
    %146 = vector.shape_cast %145 : vector<1x4x96xf32> to vector<1x4x96xf32>
    %147 = vector.broadcast %146 : vector<1x4x96xf32> to vector<2x4x96xf32>
    %148 = vector.shape_cast %147 : vector<2x4x96xf32> to vector<8x96xf32>
    %c0_42 = arith.constant 0 : index
    %c0_43 = arith.constant 0 : index
    %149 = vector.load %arg2[%c0_42, %c0_43] : memref<2x96xf32, #tpu.memory_space<vmem>>, vector<2x96xf32>
    %150 = vector.shape_cast %149 : vector<2x96xf32> to vector<1x2x96xf32>
    %151 = arith.addf %148, %143 : vector<8x96xf32>
    %152 = vector.shape_cast %151 : vector<8x96xf32> to vector<8x1x96xf32>
    %153 = vector.extract_strided_slice %152 {offsets = [0, 0, 0], sizes = [8, 1, 32], strides = [1, 1, 1]} : vector<8x1x96xf32> to vector<8x1x32xf32>
    %154 = vector.extract_strided_slice %150 {offsets = [0, 0, 0], sizes = [1, 2, 32], strides = [1, 1, 1]} : vector<1x2x96xf32> to vector<1x2x32xf32>
    %155 = vector.broadcast %153 : vector<8x1x32xf32> to vector<8x2x32xf32>
    %156 = vector.broadcast %154 : vector<1x2x32xf32> to vector<8x2x32xf32>
    %157 = arith.addf %155, %156 : vector<8x2x32xf32>
    %158 = arith.negf %157 : vector<8x2x32xf32>
    %159 = math.exp %158 : vector<8x2x32xf32>
    %cst_44 = arith.constant 1.000000e+00 : f32
    %160 = vector.broadcast %cst_44 : f32 to vector<8x2x32xf32>
    %161 = arith.addf %160, %159 : vector<8x2x32xf32>
    %162 = arith.divf %160, %161 : vector<8x2x32xf32>
    %163 = vector.extract_strided_slice %152 {offsets = [0, 0, 32], sizes = [8, 1, 32], strides = [1, 1, 1]} : vector<8x1x96xf32> to vector<8x1x32xf32>
    %164 = vector.extract_strided_slice %150 {offsets = [0, 0, 32], sizes = [1, 2, 32], strides = [1, 1, 1]} : vector<1x2x96xf32> to vector<1x2x32xf32>
    %165 = vector.broadcast %163 : vector<8x1x32xf32> to vector<8x2x32xf32>
    %166 = vector.broadcast %164 : vector<1x2x32xf32> to vector<8x2x32xf32>
    %167 = arith.addf %165, %166 : vector<8x2x32xf32>
    %168 = arith.negf %167 : vector<8x2x32xf32>
    %169 = math.exp %168 : vector<8x2x32xf32>
    %cst_45 = arith.constant 1.000000e+00 : f32
    %170 = vector.broadcast %cst_45 : f32 to vector<8x2x32xf32>
    %171 = arith.addf %170, %169 : vector<8x2x32xf32>
    %172 = arith.divf %170, %171 : vector<8x2x32xf32>
    %173 = vector.extract_strided_slice %148 {offsets = [0, 64], sizes = [8, 32], strides = [1, 1]} : vector<8x96xf32> to vector<8x32xf32>
    %174 = vector.shape_cast %173 : vector<8x32xf32> to vector<8x1x32xf32>
    %175 = vector.extract_strided_slice %150 {offsets = [0, 0, 64], sizes = [1, 2, 32], strides = [1, 1, 1]} : vector<1x2x96xf32> to vector<1x2x32xf32>
    %176 = vector.broadcast %174 : vector<8x1x32xf32> to vector<8x2x32xf32>
    %177 = vector.broadcast %175 : vector<1x2x32xf32> to vector<8x2x32xf32>
    %178 = arith.addf %176, %177 : vector<8x2x32xf32>
    %179 = vector.extract_strided_slice %143 {offsets = [0, 64], sizes = [8, 32], strides = [1, 1]} : vector<8x96xf32> to vector<8x32xf32>
    %180 = vector.shape_cast %179 : vector<8x32xf32> to vector<8x1x32xf32>
    %c0_46 = arith.constant 0 : index
    %c0_47 = arith.constant 0 : index
    %181 = vector.load %arg9[%c0_46, %c0_47] : memref<1x32xf32, #tpu.memory_space<vmem>>, vector<1x32xf32>
    %182 = vector.shape_cast %181 : vector<1x32xf32> to vector<1x1x32xf32>
    %183 = vector.broadcast %182 : vector<1x1x32xf32> to vector<8x1x32xf32>
    %184 = arith.addf %180, %183 : vector<8x1x32xf32>
    %185 = vector.broadcast %184 : vector<8x1x32xf32> to vector<8x2x32xf32>
    %186 = arith.mulf %162, %185 : vector<8x2x32xf32>
    %187 = arith.addf %178, %186 : vector<8x2x32xf32>
    %188 = math.tanh %187 : vector<8x2x32xf32>
    %cst_48 = arith.constant 1.000000e+00 : f32
    %189 = vector.broadcast %cst_48 : f32 to vector<8x2x32xf32>
    %190 = arith.subf %189, %172 : vector<8x2x32xf32>
    %191 = arith.mulf %190, %188 : vector<8x2x32xf32>
    %192 = vector.shape_cast %141 : vector<8x32xf32> to vector<8x1x32xf32>
    %193 = vector.broadcast %192 : vector<8x1x32xf32> to vector<8x2x32xf32>
    %194 = arith.mulf %172, %193 : vector<8x2x32xf32>
    %195 = arith.addf %191, %194 : vector<8x2x32xf32>
    %196 = arith.truncf %195 : vector<8x2x32xf32> to vector<8x2x32xbf16>
    %c0_49 = arith.constant 0 : index
    %c0_50 = arith.constant 0 : index
    %197 = vector.load %arg10[%c0_49, %c0_50] : memref<32x4xbf16, #tpu.memory_space<vmem>>, vector<32x4xbf16>
    "tpu.trace_start"() <{level = 10 : i32, message = "tsd,dk->tsk"}> : () -> ()
    %cst_51 = arith.constant dense<0.000000e+00> : vector<8x2x4xf32>
    %198 = tpu.matmul %196, %197, %cst_51 {dimension_numbers = #tpu.dot_dimension_numbers<[2], [0], [0, 1], [1], [0, 0, 0, 1, 1, 1], [], []>} : vector<8x2x32xbf16>, vector<32x4xbf16>, vector<8x2x4xf32> -> vector<8x2x4xf32>
    "tpu.trace_stop"() : () -> ()
    %c0_52 = arith.constant 0 : index
    %c0_53 = arith.constant 0 : index
    %199 = vector.load %arg11[%c0_52, %c0_53] : memref<1x4xf32, #tpu.memory_space<vmem>>, vector<1x4xf32>
    %200 = vector.shape_cast %199 : vector<1x4xf32> to vector<1x1x4xf32>
    %201 = vector.broadcast %200 : vector<1x1x4xf32> to vector<8x2x4xf32>
    %202 = arith.addf %198, %201 : vector<8x2x4xf32>
    %203 = vector.shape_cast %202 : vector<8x2x4xf32> to vector<8x8xf32>
    %c0_54 = arith.constant 0 : index
    %c0_55 = arith.constant 0 : index
    %204 = vector.load %arg12[%c0_54, %c0_55] : memref<8x8xf32, #tpu.memory_space<vmem>>, vector<8x8xf32>
    tpu.vector_store %arg12[%c0_54, %c0_55], %203 {strides = array<i32>} : memref<8x8xf32, #tpu.memory_space<vmem>>, vector<8x8xf32>,
    return
  }
  func.func @transform_0(%arg0: i32) -> (i32, i32, i32) {
    %c0_i32 = arith.constant 0 : i32
    %c0_i32_0 = arith.constant 0 : i32
    %c0_i32_1 = arith.constant 0 : i32
    return %c0_i32, %arg0, %c0_i32_0 : i32, i32, i32
  }
  func.func @transform_1(%arg0: i32) -> (i32, i32) {
    %c0_i32 = arith.constant 0 : i32
    %c0_i32_0 = arith.constant 0 : i32
    %c0_i32_1 = arith.constant 0 : i32
    return %c0_i32, %c0_i32_0 : i32, i32
  }
  func.func @transform_2(%arg0: i32) -> (i32, i32) {
    %c0_i32 = arith.constant 0 : i32
    %c0_i32_0 = arith.constant 0 : i32
    %c0_i32_1 = arith.constant 0 : i32
    return %c0_i32, %c0_i32_0 : i32, i32
  }
  func.func @transform_3(%arg0: i32) -> (i32, i32) {
    %c0_i32 = arith.constant 0 : i32
    %c0_i32_0 = arith.constant 0 : i32
    %c0_i32_1 = arith.constant 0 : i32
    return %c0_i32, %c0_i32_0 : i32, i32
  }
  func.func @transform_4(%arg0: i32) -> (i32, i32) {
    %c0_i32 = arith.constant 0 : i32
    %c0_i32_0 = arith.constant 0 : i32
    %c0_i32_1 = arith.constant 0 : i32
    return %c0_i32, %c0_i32_0 : i32, i32
  }
  func.func @transform_5(%arg0: i32) -> (i32, i32) {
    %c0_i32 = arith.constant 0 : i32
    %c0_i32_0 = arith.constant 0 : i32
    %c0_i32_1 = arith.constant 0 : i32
    return %c0_i32, %c0_i32_0 : i32, i32
  }
  func.func @transform_6(%arg0: i32) -> (i32, i32) {
    %c0_i32 = arith.constant 0 : i32
    %c0_i32_0 = arith.constant 0 : i32
    %c0_i32_1 = arith.constant 0 : i32
    return %c0_i32, %c0_i32_0 : i32, i32
  }
  func.func @transform_7(%arg0: i32) -> (i32, i32) {
    %c0_i32 = arith.constant 0 : i32
    %c0_i32_0 = arith.constant 0 : i32
    %c0_i32_1 = arith.constant 0 : i32
    return %c0_i32, %c0_i32_0 : i32, i32
  }
  func.func @transform_8(%arg0: i32) -> (i32, i32) {
    %c0_i32 = arith.constant 0 : i32
    %c0_i32_0 = arith.constant 0 : i32
    %c0_i32_1 = arith.constant 0 : i32
    return %c0_i32, %c0_i32_0 : i32, i32
  }
  func.func @transform_9(%arg0: i32) -> (i32, i32) {
    %c0_i32 = arith.constant 0 : i32
    %c0_i32_0 = arith.constant 0 : i32
    %c0_i32_1 = arith.constant 0 : i32
    return %c0_i32, %c0_i32_0 : i32, i32
  }
  func.func @transform_10(%arg0: i32) -> (i32, i32) {
    %c0_i32 = arith.constant 0 : i32
    %c0_i32_0 = arith.constant 0 : i32
    %c0_i32_1 = arith.constant 0 : i32
    return %c0_i32, %c0_i32_0 : i32, i32
  }
  func.func @transform_11(%arg0: i32) -> (i32, i32) {
    %c0_i32 = arith.constant 0 : i32
    %c0_i32_0 = arith.constant 0 : i32
    return %arg0, %c0_i32 : i32, i32
  }
}

</mosaic_0001>

<bundles_post_ra>
// kernel: segrnn_forward.1
= control target key start
LH: loop header
LB: loop body
LE: loop exit
PB: predicated region body
PF: predicated region fallthrough
CT: control target
= control target key end

     0   :  { %s1715_s20 = smov 0   ;;  %s1974_s0 = inlined_call_operand.vmem [shape: bf16[4,8,4], index: 0, kind: input, shape index: {}]   ;;  %s1975_s1 = inlined_call_operand.vmem [shape: f32[2,96], index: 1, kind: input, shape index: {}]   ;;  %s1976_s2 = inlined_call_operand.vmem [shape: f32[4,96], index: 2, kind: input, shape index: {}]   ;;  %s1977_s3 = inlined_call_operand.vmem [shape: bf16[4,32], index: 3, kind: input, shape index: {}]   ;;  %s1978_s5 = inlined_call_operand.vmem [shape: bf16[32,96], index: 5, kind: input, shape index: {}]   ;;  %s1979_s7 = inlined_call_operand.vmem [shape: bf16[32,96], index: 7, kind: input, shape index: {}]   ;;  %s1980_s9 = inlined_call_operand.vmem [shape: bf16[32,4], index: 9, kind: input, shape index: {}]   ;;  %s1981_s10 = inlined_call_operand.vmem [shape: f32[1,4], index: 10, kind: input, shape index: {}]   ;;  %s1982_s11 = inlined_call_operand.vmem [shape: f32[8,8], index: 11, kind: output, shape index: {}]   ;;  %s1983_s4 = inlined_call_operand.vmem [shape: f32[1,32], index: 4, kind: input, shape index: {}]   ;;  %s1984_s6 = inlined_call_operand.vmem [shape: f32[1,96], index: 6, kind: input, shape index: {}]   ;;  %s1985_s8 = inlined_call_operand.vmem [shape: f32[1,32], index: 8, kind: input, shape index: {}]  }
   0x1   :  { %v39_v0 = vld [vmem:[%s1977_s3] sm:$0x3]  ;;  %v41_v2 = vld [vmem:[%s1978_s5 + $0x4] sm:$0xf]  ;;  %v42_v3 = vld [vmem:[%s1978_s5 + $0x8] sm:$0xf] }
   0x2   :  { %v40_v1 = vld [vmem:[%s1978_s5] sm:$0xf]  ;;  %v43_v4 = vld [vmem:[%s1978_s5 + $0xc] sm:$0xf]  ;;  %v45_v6 = vld [vmem:[%s1979_s7 + $0x4] sm:$0xf] }
   0x3   :  { %v44_v5 = vld [vmem:[%s1979_s7] sm:$0xf]  ;;  %v46_v7 = vld [vmem:[%s1979_s7 + $0x8] sm:$0xf]  ;;  %v47_v8 = vld [vmem:[%s1979_s7 + $0xc] sm:$0xf] }
   0x4   :  { %v1387_v9 = vld [vmem:[%s1983_s4] ss:$0 sm:$0xff] }
   0x5   :  { %v1389_v10 = vld [vmem:[%s1984_s6] ss:$0 sm:$0xff] }
   0x6   :  { %v1385_v11 = vld [vmem:[%s1985_s8] ss:$0 sm:$0xff] }
   0x7 LB: > { %vm75_vm0 = vcmask 1041408   ;;  %v1608_v12 = vmov 0.0   ;;  %vm1609_vm1 = vmmov 0   ;;  %s1386_s4 = sshll.u32 %s1606_s20, 2  ;;  %vm71_vm2 = vcmask 31744   ;;  %s61_s20 = sadd.s32 1, %s1606_s20   ;;  %s1606_s20 = sphi %s1715_s20, %s61_s20  }
   0x8   : > { %1445 = vmatprep.subr.bf16.mxu0 %v1608_v12  ;;  %v77_v13 = vsel %vm75_vm0, %v39_v0, 0  ;;  %1447 = vmatprep.mubr.msk.bf16.mxu0 %vm1609_vm1, %v1608_v12  ;;  %s63_s21 = scalar_lea.vmem %s1974_s0, %s1386_s4  ;;  %v1391_v15 = vcombine.low %v42_v3, %v43_v4  ;;  %v1390_v16 = vcombine.low %v40_v1, %v41_v2  ;;  %vm139_vm3 = vcmask 261120   ;;  %s185_s22 = scalar_lea.vmem [#allocation2], %s1386_s4 }
   0x9   : > { %1446 = vmatpush3.bf16.msra.mxu0 %v77_v13  ;;  %1451 = vmatprep.subr.bf16.mxu1 %v1608_v12  ;;  %v64_v14 = vld [vmem:[%s63_s21] sm:$0xf]  ;;  %vm186_vm4 = vcmask 781312   ;;  %p58_p0 = scmp.ge.s32.totalorder %s61_s20, 4  }
   0xa   : > { %1455 = vmatprep.mubr.msk.bf16.mxu1 %vm1609_vm1, %v1608_v12  ;;  %1452 = vmatpush3.bf16.msra.mxu1 %v1391_v15  ;;  %v1729_v30 = vcombine.low (%p58_p0), %v46_v7, %v47_v8  ;;  %v1610_v31 = vmov (%p58_p0), 0.0   ;;  %vm1611_vm5 = vmmov (%p58_p0), 0   ;;  %v1735_v32 = vcombine.low (%p58_p0), %v44_v5, %v45_v6  ;;  %s1612_s23 = smov (%p58_p0), 64   ;;  %s1614_s0 = smov (%p58_p0), 96  }
   0xb   : > { %1453 = vmatprep.subr.bf16.mxu1 %v1608_v12  ;;  %1459 = vmatprep.subr.bf16.mxu0 (%p58_p0), %v1610_v31  ;;  %v1613_v33 = vmov (%p58_p0), 0   ;;  %vm1370_vm6 = vcmask (%p58_p0), 64512  }
   0xc   : > { %1448 = vmatmul.mubr.msk.bf16.vlgmr.msra.gmra.mxu0 %vm71_vm2, %v64_v14  ;;  %253 = vrot.lane.b32.xlu0 (%p58_p0), %v1385_v11, %s1612_s23 }
   0xd   :  { %1463 = vmatprep.mubr.msk.bf16.mxu0 (%p58_p0), %vm1611_vm5, %v1610_v31  ;;  %1460 = vmatpush3.bf16.msra.mxu0 (%p58_p0), %v1729_v30 }
   0xe   : > { %1454 = vmatpush3.bf16.msra.mxu1 %v1390_v16  ;;  %1461 = vmatprep.subr.bf16.mxu0 (%p58_p0), %v1610_v31 }
   0xf   :  { %1467 = vmatprep.subr.bf16.mxu1 (%p58_p0), %v1610_v31 }
  0x11   :  { %1462 = vmatpush3.bf16.msra.mxu0 (%p58_p0), %v1735_v32 }
  0x12   :  { %1475 = vmatprep.subr.bf16.mxu0 (%p58_p0), %v1610_v31 }
  0x14   :  { %1464 = vmatmul.mubr.bf16.vlgmr.msra.gmra.mxu0 (%p58_p0), %v1613_v33 }
  0x15   :  { %1476 = vmatpush3.bf16.msra.mxu0 (%p58_p0), %v1729_v30  ;;  %1479 = vmatprep.mubr.msk.bf16.mxu0 (%p58_p0), %vm1611_vm5, %v1610_v31 }
  0x16   :  { %1477 = vmatprep.subr.bf16.mxu0 (%p58_p0), %v1610_v31 }
  0x19   :  { %1478 = vmatpush3.bf16.msra.mxu0 (%p58_p0), %v1735_v32 }
  0x1a   :  { %1491 = vmatprep.subr.bf16.mxu0 (%p58_p0), %v1610_v31 }
  0x7e   :  { %v1754_v34 = vpop.permute.xlu0 (%p58_p0), %253 }
  0xcc   : > { %v113_v17 = vpop.f32.mrf.mxu0 }
  0xcd   : > { %v114_v18 = vadd.f32 %v1387_v9, %v113_v17 }
  0xce   : > { %v1449_v19 = vpop.f32.mrf.mxu0 }
  0xcf   : > { %v119_v20 = vmax.f32 %v114_v18, 0.0 }
  0xd0   : > { %v116_v21 = vpop.f32.mrf.mxu0 }
  0xd1   : > { %v120_v22 = vpack.c.bf16 %v119_v20, %v119_v20 }
  0xd2   : > { %v1450_v23 = vpop.f32.mrf.mxu0 }
  0xd3   : > { %1456 = vmatmul.mubr.msk.bf16.vlgmr.msra.gmra.mxu1 %vm139_vm3, %v120_v22 }
  0xd4   :  { %1468 = vmatpush3.bf16.msra.mxu1 (%p58_p0), %v1729_v30  ;;  %1471 = vmatprep.mubr.msk.bf16.mxu1 (%p58_p0), %vm1611_vm5, %v1610_v31  ;;  %v238_v35 = vpop.f32.mrf.mxu0 (%p58_p0) }
  0xd5   :  { %1469 = vmatprep.subr.bf16.mxu1 (%p58_p0), %v1610_v31  ;;  %v256_v36 = vadd.f32 (%p58_p0), %v1754_v34, %v238_v35 }
  0xd6   :  { %v1465_v37 = vpop.f32.mrf.mxu0 (%p58_p0) }
  0xd7   :  { %258 = vrot.lane.b32.xlu0 (%p58_p0), %v256_v36, %s1612_s23 }
  0xd8   :  { %1470 = vmatpush3.bf16.msra.mxu1 (%p58_p0), %v1735_v32  ;;  %v241_v38 = vpop.f32.mrf.mxu0 (%p58_p0) }
  0xd9   :  { %1483 = vmatprep.subr.bf16.mxu1 (%p58_p0), %v1610_v31 }
  0xda   :  { %v1466_v39 = vpop.f32.mrf.mxu0 (%p58_p0) }
 0x149   :  { %v259_v47 = vpop.permute.xlu0 (%p58_p0), %258 }
 0x193   : > { %v177_v24 = vpop.f32.mrf.mxu1 }
 0x194   : > { %v178_v25 = vadd.f32 %v1389_v10, %v177_v24 }
 0x195   : > { %v1457_v26 = vpop.f32.mrf.mxu1  ;;  %60 = sbr.rel (!%p58_p0) target bundleno = 7 (0x7), region = 76 }
 0x196   : > { %v183_v27 = vpack.c.bf16 %v178_v25, %v178_v25 }
 0x197   : > { %v180_v28 = vpop.f32.mrf.mxu1 }
 0x198   : > { %187 = vst.msk [vmem:[%s185_s22] sm:$0xf] %vm186_vm4, %v183_v27 }
 0x199   : > { %v1458_v29 = vpop.f32.mrf.mxu1 }
 0x19f   :  { %v244_v40 = vld [vmem:[#allocation2] sm:$0xff]   ;;  %v401_v23 = vld [vmem:[#allocation2 + $0x8] sm:$0xff]  }
 0x1a0   :  { %v245_v41 = vunpack.c.l.bf16 %v244_v40  ;;  %v325_v0 = vunpack.c.h.bf16 %v244_v40  ;;  %v402_v24 = vunpack.c.l.bf16 %v401_v23 }
 0x1a2   :  { %v246_v42 = vadd.f32 %v245_v41, %v238_v35 }
 0x1a4   :  { %v1396_v43 = vmul.f32 -1.442695, %v246_v42 }
 0x1a6   :  { %1528 = vpow2.f32 %v1396_v43 }
 0x1b3   :  { %v1529_v44 = vpop.eup %1528 }
 0x1b4   :  { %v250_v45 = vadd.f32 1.0, %v1529_v44 }
 0x1b6   :  { %1530 = vrcp.f32 %v250_v45 }
 0x1c3   :  { %v1531_v46 = vpop.eup %1530 }
 0x1c4   :  { %v261_v48 = vmul.f32 %v1531_v46, %v259_v47  ;;  %v268_v52 = vsub.f32 1.0, %v1531_v46  ;;  %v274_v54 = vmul.f32 0.0, %v1531_v46 }
 0x1c6   :  { %263 = vrot.lane.b32.xlu1 %v261_v48, %s1612_s23 }
 0x238   :  { %v264_v49 = vpop.permute.xlu1 %263 }
 0x239   :  { %v266_v50 = vadd.f32 %v264_v49, %v245_v41  ;;  %v479_v49 = vunpack.c.h.bf16 %v401_v23 }
 0x23b   :  { %1532 = vtanh.f32 %v266_v50 }
 0x248   :  { %v1533_v51 = vpop.eup %1532 }
 0x249   :  { %270 = vrot.lane.b32.xlu1 %v1533_v51, %s1614_s0 }
 0x2bb   :  { %v271_v53 = vpop.permute.xlu1 %270 }
 0x2bc   :  { %v273_v55 = vmul.f32 %v271_v53, %v268_v52 }
 0x2be   :  { %v275_v56 = vadd.f32 %v274_v54, %v273_v55 }
 0x2c0   :  { %v276_v57 = vpack.c.bf16 %v275_v56, %v275_v56 }
 0x2c2   :  { %278 = vrot.lane.b32.xlu0 %v276_v57, %s1614_s0 }
 0x334   :  { %v279_v58 = vpop.permute.xlu0 %278 }
 0x335   :  { %1472 = vmatmul.mubr.msk.bf16.vlgmr.msra.gmra.mxu1 %vm139_vm3, %v279_v58 }
 0x336   :  { %1484 = vmatpush3.bf16.msra.mxu1 %v1729_v30  ;;  %1487 = vmatprep.mubr.msk.bf16.mxu1 %vm1611_vm5, %v1610_v31 }
 0x337   :  { %1485 = vmatprep.subr.bf16.mxu1 %v1610_v31 }
 0x33a   :  { %1486 = vmatpush3.bf16.msra.mxu1 %v1735_v32 }
 0x33b   :  { %1499 = vmatprep.subr.bf16.mxu1 %v1610_v31 }
 0x3f5   :  { %v317_v59 = vpop.f32.mrf.mxu1 }
 0x3f6   :  { %v333_v60 = vadd.f32 %v317_v59, %v1754_v34  ;;  %v326_v1 = vadd.f32 %v325_v0, %v317_v59  ;;  %v812_v59 = vld [vmem:[%s1985_s8] sm:$0x1] }
 0x3f7   :  { %v1473_v61 = vpop.f32.mrf.mxu1 }
 0x3f8   :  { %335 = vrot.lane.b32.xlu1 %v333_v60, %s1612_s23  ;;  %v1398_v2 = vmul.f32 -1.442695, %v326_v1 }
 0x3f9   :  { %v320_v62 = vpop.f32.mrf.mxu1 }
 0x3fa   :  { %1534 = vpow2.f32 %v1398_v2 }
 0x3fb   :  { %v1474_v63 = vpop.f32.mrf.mxu1 }
 0x407   :  { %v1535_v3 = vpop.eup %1534 }
 0x408   :  { %v330_v4 = vadd.f32 1.0, %v1535_v3  ;;  %v1615_v3 = vmov 1966171168  }
 0x40a   :  { %1536 = vrcp.f32 %v330_v4  ;;  %v564_v4 = vunpack.c.l.s4 %v1615_v3 }
 0x417   :  { %v1537_v5 = vpop.eup %1536 }
 0x418   :  { %v345_v11 = vsub.f32 1.0, %v1537_v5  ;;  %v351_v13 = vmul.f32 %v1537_v5, %v275_v56 }
 0x46a   :  { %v336_v6 = vpop.permute.xlu1 %335 }
 0x46b   :  { %v338_v7 = vmul.f32 %v1537_v5, %v336_v6  ;;  %v566_v5 = vlaneseq  ;;  %v565_v6 = vunpack.c.0.s8 %v564_v4 }
 0x46d   :  { %340 = vrot.lane.b32.xlu0 %v338_v7, %s1612_s23  ;;  %v1801_v7 = vshrl.u32 %v566_v5, 7 }
 0x4df   :  { %v341_v8 = vpop.permute.xlu0 %340 }
 0x4e0   :  { %v343_v9 = vadd.f32 %v341_v8, %v325_v0  ;;  %v1804_v8 = vsub.s32 %v565_v6, %v1801_v7 }
 0x4e2   :  { %1538 = vtanh.f32 %v343_v9 }
 0x4ef   :  { %v1539_v10 = vpop.eup %1538 }
 0x4f0   :  { %347 = vrot.lane.b32.xlu1 %v1539_v10, %s1614_s0 }
 0x562   :  { %v348_v12 = vpop.permute.xlu1 %347 }
 0x563   :  { %v350_v14 = vmul.f32 %v348_v12, %v345_v11 }
 0x565   :  { %v352_v15 = vadd.f32 %v351_v13, %v350_v14 }
 0x567   :  { %v353_v16 = vpack.c.bf16 %v352_v15, %v352_v15 }
 0x569   :  { %355 = vrot.lane.b32.xlu0 %v353_v16, %s1614_s0 }
 0x5db   :  { %v356_v17 = vpop.permute.xlu0 %355 }
 0x5dc   :  { %1480 = vmatmul.mubr.msk.bf16.vlgmr.msra.gmra.mxu0 %vm139_vm3, %v356_v17  ;;  %v1809_v17 = vsub.s32 0, %v1801_v7 }
 0x5dd   :  { %1492 = vmatpush3.bf16.msra.mxu0 %v1729_v30  ;;  %1495 = vmatprep.mubr.msk.bf16.mxu0 %vm1611_vm5, %v1610_v31 }
 0x5de   :  { %1493 = vmatprep.subr.bf16.mxu0 %v1610_v31 }
 0x5e1   :  { %1494 = vmatpush3.bf16.msra.mxu0 %v1735_v32 }
 0x69c   :  { %v394_v18 = vpop.f32.mrf.mxu0 }
 0x69d   :  { %v410_v19 = vadd.f32 %v394_v18, %v1754_v34  ;;  %v403_v25 = vadd.f32 %v402_v24, %v394_v18 }
 0x69e   :  { %v1481_v20 = vpop.f32.mrf.mxu0 }
 0x69f   :  { %412 = vrot.lane.b32.xlu1 %v410_v19, %s1612_s23  ;;  %v1400_v26 = vmul.f32 -1.442695, %v403_v25 }
 0x6a0   :  { %v397_v21 = vpop.f32.mrf.mxu0 }
 0x6a1   :  { %1540 = vpow2.f32 %v1400_v26 }
 0x6a2   :  { %v1482_v22 = vpop.f32.mrf.mxu0 }
 0x6ae   :  { %v1541_v27 = vpop.eup %1540 }
 0x6af   :  { %v407_v28 = vadd.f32 1.0, %v1541_v27 }
 0x6b1   :  { %1542 = vrcp.f32 %v407_v28 }
 0x6be   :  { %v1543_v29 = vpop.eup %1542 }
 0x6bf   :  { %v422_v37 = vsub.f32 1.0, %v1543_v29  ;;  %v428_v39 = vmul.f32 %v1543_v29, %v352_v15 }
 0x711   :  { %v413_v30 = vpop.permute.xlu1 %412 }
 0x712   :  { %v415_v33 = vmul.f32 %v1543_v29, %v413_v30 }
 0x714   :  { %417 = vrot.lane.b32.xlu0 %v415_v33, %s1612_s23 }
 0x786   :  { %v418_v32 = vpop.permute.xlu0 %417 }
 0x787   :  { %v420_v35 = vadd.f32 %v418_v32, %v402_v24 }
 0x789   :  { %1544 = vtanh.f32 %v420_v35 }
 0x796   :  { %v1545_v36 = vpop.eup %1544 }
 0x797   :  { %424 = vrot.lane.b32.xlu1 %v1545_v36, %s1614_s0 }
 0x809   :  { %v425_v38 = vpop.permute.xlu1 %424 }
 0x80a   :  { %v427_v40 = vmul.f32 %v425_v38, %v422_v37 }
 0x80c   :  { %v429_v41 = vadd.f32 %v428_v39, %v427_v40 }
 0x80e   :  { %v430_v42 = vpack.c.bf16 %v429_v41, %v429_v41 }
 0x810   :  { %432 = vrot.lane.b32.xlu0 %v430_v42, %s1614_s0 }
 0x882   :  { %v433_v43 = vpop.permute.xlu0 %432 }
 0x883   :  { %1488 = vmatmul.mubr.msk.bf16.vlgmr.msra.gmra.mxu1 %vm139_vm3, %v433_v43 }
 0x884   :  { %1503 = vmatprep.mubr.msk.bf16.mxu1 %vm1611_vm5, %v1610_v31 }
 0x943   :  { %v471_v44 = vpop.f32.mrf.mxu1 }
 0x944   :  { %v487_v45 = vadd.f32 %v471_v44, %v1754_v34  ;;  %v480_v50 = vadd.f32 %v479_v49, %v471_v44 }
 0x945   :  { %v1489_v46 = vpop.f32.mrf.mxu1 }
 0x946   :  { %489 = vrot.lane.b32.xlu1 %v487_v45, %s1612_s23  ;;  %v1402_v51 = vmul.f32 -1.442695, %v480_v50  ;;  %v1834_v46 = vld [vmem:[%s1976_s2] sm:$0xf] }
 0x947   :  { %v474_v47 = vpop.f32.mrf.mxu1 }
 0x948   :  { %1546 = vpow2.f32 %v1402_v51 }
 0x949   :  { %v1490_v48 = vpop.f32.mrf.mxu1 }
 0x955   :  { %v1547_v52 = vpop.eup %1546 }
 0x956   :  { %v484_v53 = vadd.f32 1.0, %v1547_v52 }
 0x958   :  { %1548 = vrcp.f32 %v484_v53 }
 0x965   :  { %v1549_v54 = vpop.eup %1548 }
 0x966   :  { %v499_v60 = vsub.f32 1.0, %v1549_v54  ;;  %v505_v62 = vmul.f32 %v1549_v54, %v429_v41 }
 0x9b8   :  { %v490_v55 = vpop.permute.xlu1 %489 }
 0x9b9   :  { %v492_v56 = vmul.f32 %v1549_v54, %v490_v55  ;;  %v1845_v54 = vld [vmem:[%s1975_s1] sm:$0x3] }
 0x9bb   :  { %494 = vrot.lane.b32.xlu0 %v492_v56, %s1612_s23 }
 0xa2d   :  { %v495_v57 = vpop.permute.xlu0 %494 }
 0xa2e   :  { %v497_v58 = vadd.f32 %v495_v57, %v479_v49 }
 0xa30   :  { %1550 = vtanh.f32 %v497_v58 }
 0xa3d   :  { %v1551_v34 = vpop.eup %1550 }
 0xa3e   :  { %501 = vrot.lane.b32.xlu1 %v1551_v34, %s1614_s0 }
 0xa42   :  { %814 = vrot.lane.b32.xlu1 %v812_v59, %s1612_s23 }
 0xab0   :  { %v502_v61 = vpop.permute.xlu1 %501 }
 0xab1   :  { %v504_v63 = vmul.f32 %v502_v61, %v499_v60 }
 0xab3   :  { %v1795_v0 = vadd.f32 %v505_v62, %v504_v63 }
 0xab4   :  { %v815_v13 = vpop.permute.xlu1 %814 }
 0xab5   :  { %v507_v1 = vpack.c.bf16 %v1795_v0, %v1795_v0 }
 0xab7   :  { %509 = vrot.lane.b32.xlu0 %v507_v1, %s1614_s0 }
 0xb29   :  { %v510_v2 = vpop.permute.xlu0 %509 }
 0xb2a   :  { %1496 = vmatmul.mubr.msk.bf16.vlgmr.msra.gmra.mxu0 %vm139_vm3, %v510_v2 }
 0xbea   :  { %v548_v9 = vpop.f32.mrf.mxu0 }
 0xbeb   :  { %v762_v10 = vrot.slane %v548_v9, %v1804_v8  ;;  %v557_v14 = vcombine.high %v548_v9, %v548_v9  ;;  %v559_v47 = vadd.f32 %v1834_v46, %v548_v9 }
 0xbec   :  { %v1497_v11 = vpop.f32.mrf.mxu0 }
 0xbed   :  { %v770_v12 = vcombine.high %v762_v10, %v762_v10  ;;  %v778_v15 = vrot.slane %v762_v10, %v1804_v8  ;;  %v769_v21 = vrot.slane %v557_v14, %v1804_v8  ;;  %v569_v48 = vrot.slane %v559_v47, %v1804_v8 }
 0xbee   :  { %v551_v16 = vpop.f32.mrf.mxu0  ;;  %v560_v52 = vadd.f32 %v557_v14, %v1834_v46 }
 0xbef   :  { %v792_v18 = vrot.slane %v770_v12, %v1804_v8  ;;  %v817_v20 = vadd.f32 %v815_v13, %v778_v15  ;;  %v800_v22 = vcombine.high %v778_v15, %v778_v15  ;;  %v785_v26 = vrot.slane %v769_v21, %v1804_v8 }
 0xbf0   :  { %v1498_v19 = vpop.f32.mrf.mxu0  ;;  %v771_v28 = vcombine.high %v769_v21, %v769_v21  ;;  %v570_v49 = vcombine.high %v569_v48, %v569_v48  ;;  %v577_v50 = vrot.slane %v569_v48, %v1804_v8  ;;  %v593_v56 = vrot.slane %v560_v52, %v1804_v8 }
 0xbf1   :  { %v836_v23 = vrot.slane %v817_v20, %v1809_v17  ;;  %v818_v24 = vadd.f32 %v815_v13, %v792_v18  ;;  %v819_v27 = vadd.f32 %v815_v13, %v800_v22  ;;  %v802_v30 = vcombine.high %v792_v18, %v792_v18 }
 0xbf2   :  { %v821_v33 = vadd.f32 %v815_v13, %v785_v26  ;;  %v799_v32 = vrot.slane %v771_v28, %v1804_v8  ;;  %v801_v35 = vcombine.high %v785_v26, %v785_v26  ;;  %v584_v51 = vrot.slane %v570_v49, %v1804_v8 }
 0xbf3   :  { %865 = vrot.lane.b32.xlu0 %v836_v23, %s1612_s23  ;;  %v840_v25 = vrot.slane %v818_v24, %v1809_v17  ;;  %v844_v29 = vrot.slane %v819_v27, %v1809_v17  ;;  %v820_v36 = vadd.f32 %v815_v13, %v802_v30  ;;  %v614_v53 = vrot.slane %v577_v50, %v1809_v17 }
 0xbf4   :  { %v852_v37 = vrot.slane %v821_v33, %v1809_v17  ;;  %v822_v39 = vadd.f32 %v815_v13, %v799_v32  ;;  %v823_v40 = vadd.f32 %v815_v13, %v801_v35  ;;  %v803_v41 = vcombine.high %v799_v32, %v799_v32 }
 0xbf5   :  { %867 = vrot.lane.b32.xlu1 %v840_v25, %s1612_s23  ;;  %v848_v38 = vrot.slane %v820_v36, %v1809_v17  ;;  %v618_v55 = vrot.slane %v584_v51, %v1809_v17  ;;  %v585_v57 = vcombine.high %v577_v50, %v577_v50  ;;  %v651_v58 = vadd.f32 %v614_v53, %v1845_v54 }
 0xbf6   :  { %v856_v42 = vrot.slane %v822_v39, %v1809_v17  ;;  %v860_v43 = vrot.slane %v823_v40, %v1809_v17  ;;  %v824_v44 = vadd.f32 %v815_v13, %v803_v41  ;;  %v586_v59 = vcombine.high %v584_v51, %v584_v51 }
 0xbf7   :  { %869 = vrot.lane.b32.xlu0 %v844_v29, %s1612_s23  ;;  %v652_v34 = vadd.f32 %v618_v55, %v1845_v54  ;;  %v594_v60 = vcombine.high %v593_v56, %v593_v56  ;;  %v601_v61 = vrot.slane %v593_v56, %v1804_v8  ;;  %v622_v62 = vrot.slane %v585_v57, %v1809_v17 }
 0xbf8   :  { %v864_v45 = vrot.slane %v824_v44, %v1809_v17  ;;  %v1404_v63 = vmul.f32 -1.442695, %v651_v58  ;;  %v626_v3 = vrot.slane %v586_v59, %v1809_v17 }
 0xbf9   :  { %871 = vrot.lane.b32.xlu1 %v848_v38, %s1612_s23  ;;  %v1405_v1 = vmul.f32 -1.442695, %v652_v34  ;;  %v608_v2 = vrot.slane %v594_v60, %v1804_v8  ;;  %v609_v4 = vcombine.high %v601_v61, %v601_v61  ;;  %v630_v5 = vrot.slane %v601_v61, %v1809_v17 }
 0xbfa   :  { %v653_v6 = vadd.f32 %v622_v62, %v1845_v54  ;;  %1552 = vpow2.f32 %v1404_v63  ;;  %v654_v11 = vadd.f32 %v626_v3, %v1845_v54 }
 0xbfb   :  { %873 = vrot.lane.b32.xlu0 %v852_v37, %s1612_s23  ;;  %1554 = vpow2.f32 %v1405_v1  ;;  %v610_v9 = vcombine.high %v608_v2, %v608_v2  ;;  %v634_v10 = vrot.slane %v608_v2, %v1809_v17  ;;  %v638_v12 = vrot.slane %v609_v4, %v1809_v17 }
 0xbfc   :  { %v655_v13 = vadd.f32 %v630_v5, %v1845_v54  ;;  %v1406_v14 = vmul.f32 -1.442695, %v653_v6  ;;  %v1407_v18 = vmul.f32 -1.442695, %v654_v11  ;;  %v714_v5 = vrot.slane %v1834_v46, %v1804_v8 }
 0xbfd   :  { %875 = vrot.lane.b32.xlu1 %v856_v42, %s1612_s23  ;;  %v642_v15 = vrot.slane %v610_v9, %v1809_v17  ;;  %v656_v16 = vadd.f32 %v634_v10, %v1845_v54  ;;  %v657_v19 = vadd.f32 %v638_v12, %v1845_v54 }
 0xbfe   :  { %1556 = vpow2.f32 %v1406_v14  ;;  %v1408_v20 = vmul.f32 -1.442695, %v655_v13  ;;  %v715_v6 = vcombine.high %v714_v5, %v714_v5  ;;  %v722_v9 = vrot.slane %v714_v5, %v1804_v8 }
 0xbff   :  { %877 = vrot.lane.b32.xlu0 %v860_v43, %s1612_s23  ;;  %v658_v21 = vadd.f32 %v642_v15, %v1845_v54  ;;  %1558 = vpow2.f32 %v1407_v18  ;;  %v1409_v22 = vmul.f32 -1.442695, %v656_v16  ;;  %v1410_v23 = vmul.f32 -1.442695, %v657_v19 }
 0xc00   :  { %1560 = vpow2.f32 %v1408_v20  ;;  %v729_v10 = vrot.slane %v715_v6, %v1804_v8  ;;  %v735_v11 = vrot.slane %v722_v9, %v1809_v17  ;;  %v730_v14 = vcombine.high %v722_v9, %v722_v9 }
 0xc01   :  { %879 = vrot.lane.b32.xlu1 %v864_v45, %s1612_s23  ;;  %1562 = vpow2.f32 %v1409_v22  ;;  %v1411_v26 = vmul.f32 -1.442695, %v658_v21 }
 0xc02   :  { %1564 = vpow2.f32 %v1410_v23  ;;  %v739_v12 = vrot.slane %v729_v10, %v1809_v17  ;;  %v752_v13 = vadd.f32 %v735_v11, %v1845_v54  ;;  %v743_v19 = vrot.slane %v730_v14, %v1809_v17 }
 0xc03   :  { %1566 = vpow2.f32 %v1411_v26  ;;  %v731_v20 = vcombine.high %v729_v10, %v729_v10 }
 0xc04   :  { %v753_v15 = vadd.f32 %v739_v12, %v1845_v54  ;;  %v754_v22 = vadd.f32 %v743_v19, %v1845_v54 }
 0xc05   :  { %v747_v23 = vrot.slane %v731_v20, %v1809_v17 }
 0xc07   :  { %v1553_v24 = vpop.eup %1552  ;;  %v755_v26 = vadd.f32 %v747_v23, %v1845_v54 }
 0xc08   :  { %v1555_v25 = vpop.eup %1554  ;;  %v683_v27 = vadd.f32 1.0, %v1553_v24 }
 0xc09   :  { %v684_v28 = vadd.f32 1.0, %v1555_v25 }
 0xc0a   :  { %1568 = vrcp.f32 %v683_v27 }
 0xc0b   :  { %v1557_v29 = vpop.eup %1556  ;;  %1570 = vrcp.f32 %v684_v28 }
 0xc0c   :  { %v1559_v30 = vpop.eup %1558  ;;  %v685_v33 = vadd.f32 1.0, %v1557_v29 }
 0xc0d   :  { %v1561_v32 = vpop.eup %1560  ;;  %v686_v35 = vadd.f32 1.0, %v1559_v30 }
 0xc0e   :  { %v1563_v36 = vpop.eup %1562  ;;  %v687_v37 = vadd.f32 1.0, %v1561_v32  ;;  %1572 = vrcp.f32 %v685_v33 }
 0xc0f   :  { %v1565_v38 = vpop.eup %1564  ;;  %v688_v39 = vadd.f32 1.0, %v1563_v36  ;;  %1574 = vrcp.f32 %v686_v35 }
 0xc10   :  { %v1567_v40 = vpop.eup %1566  ;;  %v689_v41 = vadd.f32 1.0, %v1565_v38  ;;  %1576 = vrcp.f32 %v687_v37 }
 0xc11   :  { %1578 = vrcp.f32 %v688_v39  ;;  %v690_v48 = vadd.f32 1.0, %v1567_v40 }
 0xc12   :  { %1580 = vrcp.f32 %v689_v41 }
 0xc13   :  { %1582 = vrcp.f32 %v690_v48 }
 0xc17   :  { %v1865_v42 = vpop.eup %1568 }
 0xc18   :  { %v1868_v45 = vpop.eup %1570 }
 0xc1b   :  { %v1873_v50 = vpop.eup %1572 }
 0xc1c   :  { %v1876_v53 = vpop.eup %1574  ;;  %v947_v10 = vsub.f32 1.0, %v1873_v50 }
 0xc1d   :  { %v1879_v55 = vpop.eup %1576  ;;  %v948_v11 = vsub.f32 1.0, %v1876_v53 }
 0xc1e   :  { %v1883_v59 = vpop.eup %1578 }
 0xc1f   :  { %v1887_v60 = vpop.eup %1580 }
 0xc20   :  { %v1893_v2 = vpop.eup %1582 }
 0xc65   :  { %v866_v43 = vpop.permute.xlu0 %865 }
 0xc66   :  { %v889_v44 = vmul.f32 %v1865_v42, %v866_v43 }
 0xc67   :  { %v868_v47 = vpop.permute.xlu1 %867 }
 0xc68   :  { %v890_v49 = vmul.f32 %v1868_v45, %v868_v47  ;;  %905 = vrot.lane.b32.xlu0 %v889_v44, %s1612_s23 }
 0xc69   :  { %v870_v51 = vpop.permute.xlu0 %869 }
 0xc6a   :  { %907 = vrot.lane.b32.xlu1 %v890_v49, %s1612_s23  ;;  %v891_v52 = vmul.f32 %v1873_v50, %v870_v51  ;;  %v1526_v49 = vld [vmem:[%s1980_s9 + $0x8] sm:$0xff]   ;;  %v1527_v51 = vld [vmem:[%s1980_s9] sm:$0xff]  }
 0xc6b   :  { %v872_v56 = vpop.permute.xlu1 %871  ;;  %1500 = vmatpush3.bf16.msra.mxu1 %v1526_v49 }
 0xc6c   :  { %909 = vrot.lane.b32.xlu0 %v891_v52, %s1612_s23  ;;  %v892_v58 = vmul.f32 %v1876_v53, %v872_v56  ;;  %1501 = vmatprep.subr.bf16.mxu1 %v1610_v31  ;;  %v1001_v52 = vrot.slane %v1795_v0, %v1804_v8  ;;  %v994_v56 = vcombine.high %v1795_v0, %v1795_v0  ;;  %v946_v0 = vsub.f32 1.0, %v1868_v45 }
 0xc6d   :  { %v874_v57 = vpop.permute.xlu0 %873 }
 0xc6e   :  { %v893_v34 = vmul.f32 %v1879_v55, %v874_v57  ;;  %911 = vrot.lane.b32.xlu1 %v892_v58, %s1612_s23  ;;  %v1009_v57 = vcombine.high %v1001_v52, %v1001_v52  ;;  %v1008_v58 = vrot.slane %v994_v56, %v1804_v8 }
 0xc6f   :  { %v876_v61 = vpop.permute.xlu1 %875  ;;  %1502 = vmatpush3.bf16.msra.mxu1 %v1527_v51 }
 0xc70   :  { %913 = vrot.lane.b32.xlu0 %v893_v34, %s1612_s23  ;;  %v894_v63 = vmul.f32 %v1883_v59, %v876_v61  ;;  %v1031_v61 = vrot.slane %v1009_v57, %v1804_v8  ;;  %v1024_v5 = vrot.slane %v1008_v58, %v1804_v8 }
 0xc71   :  { %v878_v62 = vpop.permute.xlu0 %877 }
 0xc72   :  { %v895_v1 = vmul.f32 %v1887_v60, %v878_v62  ;;  %915 = vrot.lane.b32.xlu1 %v894_v63, %s1612_s23  ;;  %v1017_v62 = vrot.slane %v1001_v52, %v1804_v8  ;;  %v1050_v14 = vrot.slane %v1031_v61, %v1809_v17 }
 0xc73   :  { %v880_v3 = vpop.permute.xlu1 %879 }
 0xc74   :  { %917 = vrot.lane.b32.xlu0 %v895_v1, %s1612_s23  ;;  %v896_v4 = vmul.f32 %v1893_v2, %v880_v3  ;;  %v1010_v1 = vcombine.high %v1008_v58, %v1008_v58  ;;  %v1041_v3 = vcombine.high %v1031_v61, %v1031_v61  ;;  %v1046_v6 = vrot.slane %v1017_v62, %v1809_v17 }
 0xc75   :  { %v1084_v23 = vmul.f32 %v1868_v45, %v1050_v14  ;;  %v951_v45 = vsub.f32 1.0, %v1887_v60 }
 0xc76   :  { %919 = vrot.lane.b32.xlu1 %v896_v4, %s1612_s23  ;;  %v1039_v4 = vcombine.high %v1017_v62, %v1017_v62  ;;  %v1038_v9 = vrot.slane %v1010_v1, %v1804_v8  ;;  %v1058_v12 = vrot.slane %v1041_v3, %v1809_v17 }
 0xcda   :  { %v906_v16 = vpop.permute.xlu0 %905 }
 0xcdb   :  { %v929_v18 = vadd.f32 %v906_v16, %v752_v13 }
 0xcdc   :  { %v908_v46 = vpop.permute.xlu1 %907 }
 0xcdd   :  { %1584 = vtanh.f32 %v929_v18  ;;  %v930_v21 = vadd.f32 %v908_v46, %v753_v15  ;;  %v1040_v18 = vcombine.high %v1024_v5, %v1024_v5  ;;  %v1086_v46 = vmul.f32 %v1876_v53, %v1058_v12 }
 0xcde   :  { %v910_v24 = vpop.permute.xlu0 %909 }
 0xcdf   :  { %1586 = vtanh.f32 %v930_v21  ;;  %v931_v25 = vadd.f32 %v910_v24, %v754_v22 }
 0xce0   :  { %v912_v27 = vpop.permute.xlu1 %911 }
 0xce1   :  { %1588 = vtanh.f32 %v931_v25  ;;  %v932_v29 = vadd.f32 %v912_v27, %v755_v26  ;;  %v1066_v25 = vrot.slane %v1038_v9, %v1809_v17 }
 0xce2   :  { %v914_v28 = vpop.permute.xlu0 %913 }
 0xce3   :  { %v933_v30 = vadd.f32 %v914_v28, %v752_v13  ;;  %1590 = vtanh.f32 %v932_v29  ;;  %v945_v13 = vsub.f32 1.0, %v1865_v42  ;;  %v949_v29 = vsub.f32 1.0, %v1879_v55 }
 0xce4   :  { %v916_v32 = vpop.permute.xlu1 %915  ;;  %v1088_v53 = vmul.f32 %v1883_v59, %v1066_v25 }
 0xce5   :  { %1592 = vtanh.f32 %v933_v30  ;;  %v934_v36 = vadd.f32 %v916_v32, %v753_v15  ;;  %v1054_v15 = vrot.slane %v1039_v4, %v1809_v17  ;;  %v950_v30 = vsub.f32 1.0, %v1883_v59 }
 0xce6   :  { %v918_v35 = vpop.permute.xlu0 %917  ;;  %v1062_v32 = vrot.slane %v1024_v5, %v1809_v17 }
 0xce7   :  { %v935_v37 = vadd.f32 %v918_v35, %v754_v22  ;;  %1594 = vtanh.f32 %v934_v36  ;;  %v1085_v24 = vmul.f32 %v1873_v50, %v1054_v15  ;;  %v1617_v15 = vmov 1934713408  }
 0xce8   :  { %v920_v54 = vpop.permute.xlu1 %919 }
 0xce9   :  { %1596 = vtanh.f32 %v935_v37  ;;  %v936_v39 = vadd.f32 %v920_v54, %v755_v26  ;;  %v1042_v26 = vcombine.high %v1038_v9, %v1038_v9 }
 0xcea   :  { %v1585_v33 = vpop.eup %1584 }
 0xceb   :  { %961 = vrot.lane.b32.xlu0 %v1585_v33, %s1614_s0  ;;  %1598 = vtanh.f32 %v936_v39  ;;  %v1083_v33 = vmul.f32 %v1865_v42, %v1046_v6  ;;  %v1087_v39 = vmul.f32 %v1879_v55, %v1062_v32  ;;  %v1074_v42 = vrot.slane %v1042_v26, %v1809_v17 }
 0xcec   :  { %v1587_v38 = vpop.eup %1586  ;;  %v1616_v6 = vmov 1983009808  }
 0xced   :  { %963 = vrot.lane.b32.xlu1 %v1587_v38, %s1614_s0  ;;  %v1090_v56 = vmul.f32 %v1893_v2, %v1074_v42  ;;  %v1190_v9 = vunpack.c.l.s4 %v1616_v6 }
 0xcee   :  { %v1589_v40 = vpop.eup %1588 }
 0xcef   :  { %965 = vrot.lane.b32.xlu0 %v1589_v40, %s1614_s0  ;;  %v1070_v40 = vrot.slane %v1040_v18, %v1809_v17 }
 0xcf0   :  { %v1591_v41 = vpop.eup %1590 }
 0xcf1   :  { %967 = vrot.lane.b32.xlu1 %v1591_v41, %s1614_s0  ;;  %v952_v41 = vsub.f32 1.0, %v1893_v2 }
 0xcf2   :  { %v1593_v43 = vpop.eup %1592 }
 0xcf3   :  { %969 = vrot.lane.b32.xlu0 %v1593_v43, %s1614_s0 }
 0xcf4   :  { %v1595_v44 = vpop.eup %1594 }
 0xcf5   :  { %971 = vrot.lane.b32.xlu1 %v1595_v44, %s1614_s0 }
 0xcf6   :  { %v1597_v47 = vpop.eup %1596 }
 0xcf7   :  { %973 = vrot.lane.b32.xlu0 %v1597_v47, %s1614_s0 }
 0xcf8   :  { %v1599_v48 = vpop.eup %1598 }
 0xcf9   :  { %975 = vrot.lane.b32.xlu1 %v1599_v48, %s1614_s0  ;;  %v1089_v48 = vmul.f32 %v1887_v60, %v1070_v40 }
 0xd5d   :  { %v962_v34 = vpop.permute.xlu0 %961 }
 0xd5e   :  { %v985_v27 = vmul.f32 %v962_v34, %v945_v13 }
 0xd5f   :  { %v964_v63 = vpop.permute.xlu1 %963 }
 0xd60   :  { %v986_v19 = vmul.f32 %v964_v63, %v946_v0  ;;  %v1091_v43 = vadd.f32 %v1083_v33, %v985_v27  ;;  %v1191_v0 = vunpack.c.0.s8 %v1190_v9 }
 0xd61   :  { %v966_v31 = vpop.permute.xlu0 %965 }
 0xd62   :  { %v987_v20 = vmul.f32 %v966_v31, %v947_v10  ;;  %v1092_v36 = vadd.f32 %v1084_v23, %v986_v19  ;;  %v1412_v10 = vld [vmem:[%s1981_s10] ss:$0 sm:$0xff]  ;;  %v1194_v12 = vsub.s32 %v1191_v0, %v1801_v7  ;;  %s1618_s10 = smov 4  }
 0xd63   :  { %v968_v16 = vpop.permute.xlu1 %967 }
 0xd64   :  { %v988_v21 = vmul.f32 %v968_v16, %v948_v11  ;;  %v1093_v50 = vadd.f32 %v1085_v24, %v987_v20  ;;  %v1413_v51 = vpack.c.bf16 %v1092_v36, %v1091_v43  ;;  %v1188_v11 = vcombine.low %v1412_v10, %v1412_v10 }
 0xd65   :  { %v970_v22 = vpop.permute.xlu0 %969 }
 0xd66   :  { %v1094_v28 = vadd.f32 %v1086_v46, %v988_v21  ;;  %v989_v37 = vmul.f32 %v970_v22, %v949_v29  ;;  %v1135_v62 = vrot.slane %v1413_v51, %v1804_v8  ;;  %v1195_v13 = vrot.slane %v1188_v11, %v1194_v12 }
 0xd67   :  { %v972_v35 = vpop.permute.xlu1 %971 }
 0xd68   :  { %v990_v38 = vmul.f32 %v972_v35, %v950_v30  ;;  %v1414_v44 = vpack.c.bf16 %v1094_v28, %v1093_v50  ;;  %v1095_v52 = vadd.f32 %v1087_v39, %v989_v37  ;;  %v1196_v14 = vcombine.low %v1195_v13, %v1195_v13 }
 0xd69   :  { %v974_v54 = vpop.permute.xlu0 %973 }
 0xd6a   :  { %v1096_v47 = vadd.f32 %v1088_v53, %v990_v38  ;;  %v991_v59 = vmul.f32 %v974_v54, %v951_v45  ;;  %v1142_v55 = vrot.slane %v1414_v44, %v1804_v8 }
 0xd6b   :  { %v976_v49 = vpop.permute.xlu1 %975 }
 0xd6c   :  { %v992_v57 = vmul.f32 %v976_v49, %v952_v41  ;;  %v1415_v58 = vpack.c.bf16 %v1096_v47, %v1095_v52  ;;  %v1097_v34 = vadd.f32 %v1089_v48, %v991_v59  ;;  %v1157_v3 = vcombine.low %v1135_v62, %v1142_v55 }
 0xd6e   :  { %v1098_v61 = vadd.f32 %v1090_v56, %v992_v57  ;;  %v1149_v63 = vrot.slane %v1415_v58, %v1804_v8  ;;  %v1165_v4 = vrot.slane %v1157_v3, %v1804_v8 }
 0xd70   :  { %v1416_v17 = vpack.c.bf16 %v1098_v61, %v1097_v34 }
 0xd72   :  { %v1156_v1 = vrot.slane %v1416_v17, %v1804_v8 }
 0xd74   :  { %v1158_v60 = vcombine.low %v1149_v63, %v1156_v1 }
 0xd76   :  { %v1172_v31 = vrot.slane %v1158_v60, %v1804_v8  ;;  %v1288_v8 = vunpack.c.l.s4 %v1617_v15 }
 0xd78   :  { %v1173_v2 = vcombine.low %v1165_v4, %v1172_v31  ;;  %v1289_v19 = vunpack.c.0.s8 %v1288_v8 }
 0xd7a   :  { %1174 = vrot.lane.b32.xlu0 %v1173_v2, %s1614_s0  ;;  %v1292_v26 = vsub.s32 %v1289_v19, %v1801_v7 }
 0xdec   :  { %v1175_v5 = vpop.permute.xlu0 %1174 }
 0xded   :  { %1504 = vmatmul.mubr.msk.bf16.vlgmr.msra.gmra.mxu1 %vm139_vm3, %v1175_v5 }
 0xead   :  { %v1235_v16 = vpop.f32.mrf.mxu1 }
 0xeae   :  { %v1236_v18 = vadd.f32 %v1235_v16, %v1196_v14 }
 0xeaf   :  { %v1505_v20 = vpop.f32.mrf.mxu1 }
 0xeb0   :  { %v1244_v46 = vcombine.high %v1236_v18, %v1236_v18  ;;  %v1251_v21 = vrot.slane %v1236_v18, %v1194_v12 }
 0xeb1   :  { %v1238_v22 = vpop.f32.mrf.mxu1 }
 0xeb2   :  { %v1258_v23 = vrot.slane %v1244_v46, %v1194_v12  ;;  %v1259_v24 = vcombine.high %v1251_v21, %v1251_v21  ;;  %v1239_v25 = vadd.f32 %v1238_v22, %v1196_v14 }
 0xeb3   :  { %v1506_v27 = vpop.f32.mrf.mxu1 }
 0xeb4   :  { %v1260_v28 = vcombine.high %v1258_v23, %v1258_v23  ;;  %v1286_v29 = vcombine.low %v1251_v21, %v1259_v24  ;;  %v1261_v30 = vcombine.high %v1239_v25, %v1239_v25  ;;  %v1268_v33 = vrot.slane %v1239_v25, %v1194_v12 }
 0xeb6   :  { %v1295_v32 = vcombine.low %v1258_v23, %v1260_v28  ;;  %v1275_v53 = vrot.slane %v1261_v30, %v1194_v12  ;;  %v1276_v35 = vcombine.high %v1268_v33, %v1268_v33  ;;  %v1293_v45 = vrot.slane %v1286_v29, %v1292_v26 }
 0xeb8   :  { %v1302_v36 = vrot.slane %v1295_v32, %v1292_v26  ;;  %v1277_v50 = vcombine.high %v1275_v53, %v1275_v53  ;;  %v1304_v37 = vcombine.low %v1268_v33, %v1276_v35 }
 0xeba   :  { %v1313_v38 = vcombine.low %v1275_v53, %v1277_v50  ;;  %v1326_v54 = vcombine.low %v1293_v45, %v1302_v36  ;;  %v1311_v39 = vrot.slane %v1304_v37, %v1292_v26  ;;  %v1420_v41 = vcombine.high %v1293_v45, %v1302_v36 }
 0xebc   :  { %v1320_v40 = vrot.slane %v1313_v38, %v1292_v26  ;;  %v1356_v7 = vrot.slane %v1420_v41, %v1194_v12  ;;  %v1334_v47 = vrot.slane %v1326_v54, %v1194_v12 }
 0xebe   :  { %v1421_v42 = vcombine.high %v1311_v39, %v1320_v40  ;;  %v1327_v43 = vcombine.low %v1311_v39, %v1320_v40 }
 0xec0   :  { %v1363_v44 = vrot.slane %v1421_v42, %v1194_v12  ;;  %v1341_v59 = vrot.slane %v1327_v43, %v1194_v12 }
 0xec2   :  { %v1364_v48 = vcombine.low %v1356_v7, %v1363_v44  ;;  %v1342_v49 = vcombine.low %v1334_v47, %v1341_v59 }
 0xec4   :  { %1365 = vrot.lane.b32.xlu1 %v1364_v48, %s1618_s10 }
 0xf36   :  { %v1366_v51 = vpop.permute.xlu1 %1365 }
 0xf37   :  { %v1369_v52 = vsel %vm71_vm2, %v1342_v49, %v1366_v51 }
 0xf38   :  { %1371 = vst.msk [vmem:[%s1982_s11] sm:$0xff] %vm1370_vm6, %v1369_v52 }

</bundles_post_ra>
